<compile_context>
chip_gen: v6e
topology: v6e:2x2x1
jax: 0.10.0
libtpu: 0.0.40
codegen_flags: <defaults>
</compile_context>

<pallas_src>
import functools

import numpy as np
import jax
import jax.numpy as jnp
from jax import lax
from jax.experimental import pallas as pl
from jax.experimental.pallas import tpu as pltpu

# ----------------------------- configuration --------------------------------
B = 2   # batch
C = 4   # coils
H = 16  # rows
W = 16  # cols
F = 4   # hidden channels of the regularizer CNN


# ------------------------ constant-matrix builders ---------------------------
def centered_dft_matrix(n: int, inverse: bool) -> jnp.ndarray:
    """Matrix M (complex64) with M @ v == fftshift((i)fft(ifftshift(v), norm='ortho'))."""
    eye = jnp.eye(n, dtype=jnp.complex64)
    shifted = jnp.fft.ifftshift(eye, axes=0)
    t = (jnp.fft.ifft(shifted, axis=0, norm="ortho") if inverse
         else jnp.fft.fft(shifted, axis=0, norm="ortho"))
    return jnp.fft.fftshift(t, axes=0)


def _dft_block_constants(b, c, h, w, inverse):
    """Block matrices for a complex centered 2-D DFT done as 3 lane-dense matmuls.

    Data layout: rows = (b, h), lanes = [real: (c, w) | imag: (c, w)]  (width 2*C*W).
      AB  = L_stacked @ X              # stacked per-batch H-axis DFT (Re; Im parts)
      Y   = AB[:BH] @ Ra + AB[BH:] @ Rb  # W-axis DFT fused with complex recombination
    """
    mh = centered_dft_matrix(h, inverse)
    mw = centered_dft_matrix(w, inverse)
    hr = jnp.real(mh).astype(jnp.float32)
    hi = jnp.imag(mh).astype(jnp.float32)
    wr = jnp.real(mw).T.astype(jnp.float32)   # right-multiply form (x @ M^T)
    wi = jnp.imag(mw).T.astype(jnp.float32)
    eye_b = jnp.eye(b, dtype=jnp.float32)
    # stacked per-batch block-diagonal H-axis transform: [BD(Re); BD(Im)] -> (2*B*H, B*H)
    l_stacked = jnp.concatenate([jnp.kron(eye_b, hr), jnp.kron(eye_b, hi)], axis=0)
    # coil-block-diagonal W-axis transform on each real/imag half of the lanes
    eye_c = jnp.eye(c, dtype=jnp.float32)
    wr_c = jnp.kron(eye_c, wr)                # (C*W, C*W)
    wi_c = jnp.kron(eye_c, wi)
    ra = jnp.concatenate([jnp.concatenate([wr_c, wi_c], axis=1),
                          jnp.concatenate([-wi_c, wr_c], axis=1)], axis=0)    # (2CW, 2CW)
    rb = jnp.concatenate([jnp.concatenate([-wi_c, wr_c], axis=1),
                          jnp.concatenate([-wr_c, -wi_c], axis=1)], axis=0)   # (2CW, 2CW)
    return l_stacked, ra, rb


def _conv_tap_matrices(wgt, w):
    """HWIO (3,3,cin,cout) conv weights -> (3, cin*W, cout*W) per-dy lane-mixing matrices."""
    wgt = wgt.astype(jnp.float32)
    d = [jnp.eye(w, k=1, dtype=jnp.float32),     # dx = -1  (x[.., j-1])
         jnp.eye(w, k=0, dtype=jnp.float32),     # dx =  0
         jnp.eye(w, k=-1, dtype=jnp.float32)]    # dx = +1  (x[.., j+1])
    mats = []
    for dy in range(3):
        t = sum(jnp.kron(wgt[dy, dx], d[dx]) for dx in range(3))
        mats.append(t)
    return jnp.stack(mats, axis=0)


# ------------------------------- the kernel ----------------------------------
def varnet_block_kernel(
    kx_ref, k0_ref, dcm_ref, s1_ref, s2_ref,
    li_ref, rai_ref, rbi_ref, lf_ref, raf_ref, rbf_ref,
    sumr_ref, expr_ref, t1_ref, t2_ref, b1_ref, b2_ref,
    out_ref, *, n_h: int, half_lanes: int,
):
    f32 = jnp.float32

    def mm(a, b):
        return jnp.dot(a, b, preferred_element_type=f32)

    n_bh = kx_ref.shape[0]          # B*H

    kx = kx_ref[...]

    # -------- sens_reduce: ifft2c(k), * conj(S), coil sum (MXU + one XLU roll) --------
    ab = mm(li_ref[...], kx)                                          # (2*BH, 2CW)
    img = mm(ab[:n_bh], rai_ref[...]) + mm(ab[n_bh:], rbi_ref[...])   # [img_r | img_i]
    img_sw = pltpu.roll(img, shift=half_lanes, axis=1)                # [img_i | img_r]
    red = mm(img * s1_ref[...] + img_sw * s2_ref[...], sumr_ref[...])  # (BH, 2W) coil sum

    # -------- regularizer CNN: Conv3x3(2->F) -> ReLU -> Conv3x3(F->2) --------
    row_in_block = lax.broadcasted_iota(jnp.int32, (n_bh, 1), 0) % n_h
    mask_up = (row_in_block != 0).astype(f32)          # valid rows for tap i-1
    mask_dn = (row_in_block != n_h - 1).astype(f32)    # valid rows for tap i+1

    def conv3x3(x, t_ref, bias_ref):
        # dy taps: sublane rolls (XLU) + per-image-block zero padding.
        x_up = pltpu.roll(x, shift=1, axis=0) * mask_up           # row i holds x[i-1]
        x_dn = pltpu.roll(x, shift=n_bh - 1, axis=0) * mask_dn    # row i holds x[i+1]
        # dx taps + channel mixing: one matmul per dy against a (cin*W, cout*W) matrix.
        return (mm(x_up, t_ref[0]) + mm(x, t_ref[1]) + mm(x_dn, t_ref[2])
                + bias_ref[...])

    h1 = jnp.maximum(conv3x3(red, t1_ref, b1_ref), 0.0)
    mdl = conv3x3(h1, t2_ref, b2_ref)                  # (BH, 2W): [m_r | m_i]

    # -------- sens_expand: fft2c( model_image * S ) --------
    m_exp = mm(mdl, expr_ref[...])                     # broadcast over coils (MXU)
    m_sw = pltpu.roll(m_exp, shift=half_lanes, axis=1)
    e = m_exp * s1_ref[...] - m_sw * s2_ref[...]       # model_image * S
    abf = mm(lf_ref[...], e)
    reg = mm(abf[:n_bh], raf_ref[...]) + mm(abf[n_bh:], rbf_ref[...])

    # -------- k_out = k - mask*dc_weight*(k - k0) - reg --------
    out_ref[...] = kx - dcm_ref[...] * (kx - k0_ref[...]) - reg


# ------------------------------- wrapper --------------------------------------
@jax.jit
def varnet_block_forward(current_kspace, ref_kspace, mask, sens_maps, params):
    """current/ref_kspace, sens_maps: (B, C, H, W, 2) f32; mask: (B, 1, 1, W, 1) f32."""
    b, c, h, w, _ = current_kspace.shape
    bh = b * h
    cw = c * w
    lanes = 2 * cw

    def to_lanes(x):  # (B,C,H,W,2) -> (B*H, 2*C*W), lanes = [real coils | imag coils]
        return jnp.transpose(x, (0, 2, 4, 1, 3)).reshape(bh, lanes).astype(jnp.float32)

    kx = to_lanes(current_kspace)
    k0x = to_lanes(ref_kspace)

    sr = jnp.transpose(sens_maps[..., 0], (0, 2, 1, 3)).reshape(bh, cw).astype(jnp.float32)
    si = jnp.transpose(sens_maps[..., 1], (0, 2, 1, 3)).reshape(bh, cw).astype(jnp.float32)
    s1 = jnp.concatenate([sr, sr], axis=1)          # [s_r | s_r]
    s2 = jnp.concatenate([si, -si], axis=1)         # [s_i | -s_i]

    dcw = params["dc_weight"].astype(jnp.float32)[0]
    mask_b = mask[:, 0, 0, :, 0].astype(jnp.float32) * dcw                  # (B, W)
    dcm = jnp.broadcast_to(mask_b[:, None, None, None, :],
                           (b, h, 2, c, w)).reshape(bh, lanes)              # (BH, 2CW)

    li, rai, rbi = _dft_block_constants(b, c, h, w, inverse=True)
    lf, raf, rbf = _dft_block_constants(b, c, h, w, inverse=False)

    eye_w = jnp.eye(w, dtype=jnp.float32)
    eye_2 = jnp.eye(2, dtype=jnp.float32)
    sum_r = jnp.kron(eye_2, jnp.kron(jnp.ones((c, 1), jnp.float32), eye_w))     # (2CW, 2W)
    expand_r = jnp.kron(eye_2, jnp.kron(jnp.ones((1, c), jnp.float32), eye_w))  # (2W, 2CW)

    t1 = _conv_tap_matrices(params["w1"], w)                  # (3, 2W, F*W)
    t2 = _conv_tap_matrices(params["w2"], w)                  # (3, F*W, 2W)
    bias1 = jnp.repeat(params["b1"].astype(jnp.float32), w)[None, :]   # (1, F*W)
    bias2 = jnp.repeat(params["b2"].astype(jnp.float32), w)[None, :]   # (1, 2W)

    vmem = pl.BlockSpec(memory_space=pltpu.MemorySpace.VMEM)

    out = pl.pallas_call(
        functools.partial(varnet_block_kernel, n_h=h, half_lanes=cw),
        out_shape=jax.ShapeDtypeStruct((bh, lanes), jnp.float32),
        in_specs=[vmem] * 17,
        out_specs=vmem,
        input_output_aliases={0: 0},   # reuse the current-kspace buffer for the output
    )(kx, k0x, dcm, s1, s2, li, rai, rbi, lf, raf, rbf,
      sum_r, expand_r, t1, t2, bias1, bias2)

    out5 = out.reshape(b, h, 2, c, w)
    return jnp.transpose(out5, (0, 3, 1, 4, 2))               # (B, C, H, W, 2)


# --------------------------- pure-JAX reference --------------------------------
def _ifft2c(x):
    return jnp.fft.fftshift(
        jnp.fft.ifft2(jnp.fft.ifftshift(x, axes=(-2, -1)), axes=(-2, -1), norm="ortho"),
        axes=(-2, -1))


def _fft2c(x):
    return jnp.fft.fftshift(
        jnp.fft.fft2(jnp.fft.ifftshift(x, axes=(-2, -1)), axes=(-2, -1), norm="ortho"),
        axes=(-2, -1))


@jax.jit
def reference_forward(current_kspace, ref_kspace, mask, sens_maps, params):
    k = current_kspace[..., 0] + 1j * current_kspace[..., 1]
    k0 = ref_kspace[..., 0] + 1j * ref_kspace[..., 1]
    s = sens_maps[..., 0] + 1j * sens_maps[..., 1]
    m = mask[..., 0]                                  # (B, 1, 1, W)
    dcw = params["dc_weight"][0]

    dc = m * (k - k0) * dcw

    img = _ifft2c(k)                                  # (B, C, H, W)
    red = jnp.sum(img * jnp.conj(s), axis=1)          # (B, H, W), n_maps = 1
    x = jnp.stack([red.real, red.imag], axis=-1)      # NHWC, 2 channels
    h1 = lax.conv_general_dilated(
        x, params["w1"], (1, 1), "SAME",
        dimension_numbers=("NHWC", "HWIO", "NHWC"),
        precision=lax.Precision.HIGHEST) + params["b1"]
    h1 = jnp.maximum(h1, 0.0)
    y = lax.conv_general_dilated(
        h1, params["w2"], (1, 1), "SAME",
        dimension_numbers=("NHWC", "HWIO", "NHWC"),
        precision=lax.Precision.HIGHEST) + params["b2"]
    img_m = y[..., 0] + 1j * y[..., 1]                # (B, H, W)
    reg = _fft2c(img_m[:, None] * s)                  # (B, C, H, W)
    out = k - dc - reg
    return jnp.stack([out.real, out.imag], axis=-1)


# ----------------------------------- main --------------------------------------
if __name__ == "__main__":
    key = jax.random.PRNGKey(0)
    k1, k2, k3, k4, k5, k6, k7 = jax.random.split(key, 7)

    current_kspace = jax.random.normal(k1, (B, C, H, W, 2), dtype=jnp.float32)
    ref_kspace = jax.random.normal(k2, (B, C, H, W, 2), dtype=jnp.float32)
    sens_maps = 0.5 * jax.random.normal(k3, (B, C, H, W, 2), dtype=jnp.float32)

    cols = jnp.arange(W)
    mask_1d = ((cols % 2 == 0) | (jnp.abs(cols - W // 2) <= 2)).astype(jnp.float32)
    mask = jnp.broadcast_to(mask_1d[None, None, None, :, None], (B, 1, 1, W, 1))

    params = {
        "dc_weight": jnp.ones((1,), jnp.float32),                       # nn.Parameter(torch.ones(1))
        "w1": 0.1 * jax.random.normal(k4, (3, 3, 2, F), jnp.float32),   # regularizer conv1 (HWIO)
        "b1": 0.05 * jax.random.normal(k5, (F,), jnp.float32),
        "w2": 0.1 * jax.random.normal(k6, (3, 3, F, 2), jnp.float32),   # regularizer conv2 (HWIO)
        "b2": 0.05 * jax.random.normal(k7, (2,), jnp.float32),
    }

    out = jax.block_until_ready(
        varnet_block_forward(current_kspace, ref_kspace, mask, sens_maps, params))
    ref = jax.block_until_ready(
        reference_forward(current_kspace, ref_kspace, mask, sens_maps, params))

    np.testing.assert_allclose(np.asarray(out), np.asarray(ref), rtol=1e-2, atol=1e-2)
    print("KERNEL_OK")
</pallas_src>

<mosaic_0001>
module attributes {stable_mosaic.version = 11 : i64} {
  func.func @varnet_block_kernel(%arg0: memref<32x128xf32, #tpu.memory_space<vmem>>, %arg1: memref<32x128xf32, #tpu.memory_space<vmem>>, %arg2: memref<32x128xf32, #tpu.memory_space<vmem>>, %arg3: memref<32x128xf32, #tpu.memory_space<vmem>>, %arg4: memref<32x128xf32, #tpu.memory_space<vmem>>, %arg5: memref<64x32xf32, #tpu.memory_space<vmem>>, %arg6: memref<128x128xf32, #tpu.memory_space<vmem>>, %arg7: memref<128x128xf32, #tpu.memory_space<vmem>>, %arg8: memref<64x32xf32, #tpu.memory_space<vmem>>, %arg9: memref<128x128xf32, #tpu.memory_space<vmem>>, %arg10: memref<128x128xf32, #tpu.memory_space<vmem>>, %arg11: memref<128x32xf32, #tpu.memory_space<vmem>>, %arg12: memref<32x128xf32, #tpu.memory_space<vmem>>, %arg13: memref<3x32x64xf32, #tpu.memory_space<vmem>>, %arg14: memref<3x64x32xf32, #tpu.memory_space<vmem>>, %arg15: memref<1x64xf32, #tpu.memory_space<vmem>>, %arg16: memref<1x32xf32, #tpu.memory_space<vmem>>, %arg17: memref<32x128xf32, #tpu.memory_space<vmem>>) attributes {dimension_semantics = [], scalar_prefetch = 0 : i64, scratch_operands = 0 : i64, tpu.core_type = #tpu.core_type<tc>} {
    %c0 = arith.constant 0 : index
    %c0_0 = arith.constant 0 : index
    %0 = vector.load %arg0[%c0, %c0_0] : memref<32x128xf32, #tpu.memory_space<vmem>>, vector<32x128xf32>
    %c0_1 = arith.constant 0 : index
    %c0_2 = arith.constant 0 : index
    %1 = vector.load %arg5[%c0_1, %c0_2] : memref<64x32xf32, #tpu.memory_space<vmem>>, vector<64x32xf32>
    %cst = arith.constant dense<0.000000e+00> : vector<64x128xf32>
    %2 = tpu.matmul %1, %0, %cst {dimension_numbers = #tpu.dot_dimension_numbers<[1], [0], [0], [1], [0, 0, 1, 1], [], []>} : vector<64x32xf32>, vector<32x128xf32>, vector<64x128xf32> -> vector<64x128xf32>
    %3 = vector.extract_strided_slice %2 {offsets = [0, 0], sizes = [32, 128], strides = [1, 1]} : vector<64x128xf32> to vector<32x128xf32>
    %c0_3 = arith.constant 0 : index
    %c0_4 = arith.constant 0 : index
    %4 = vector.load %arg6[%c0_3, %c0_4] : memref<128x128xf32, #tpu.memory_space<vmem>>, vector<128x128xf32>
    %cst_5 = arith.constant dense<0.000000e+00> : vector<32x128xf32>
    %5 = tpu.matmul %3, %4, %cst_5 {dimension_numbers = #tpu.dot_dimension_numbers<[1], [0], [0], [1], [0, 0, 1, 1], [], []>} : vector<32x128xf32>, vector<128x128xf32>, vector<32x128xf32> -> vector<32x128xf32>
    %6 = vector.extract_strided_slice %2 {offsets = [32, 0], sizes = [32, 128], strides = [1, 1]} : vector<64x128xf32> to vector<32x128xf32>
    %c0_6 = arith.constant 0 : index
    %c0_7 = arith.constant 0 : index
    %7 = vector.load %arg7[%c0_6, %c0_7] : memref<128x128xf32, #tpu.memory_space<vmem>>, vector<128x128xf32>
    %cst_8 = arith.constant dense<0.000000e+00> : vector<32x128xf32>
    %8 = tpu.matmul %6, %7, %cst_8 {dimension_numbers = #tpu.dot_dimension_numbers<[1], [0], [0], [1], [0, 0, 1, 1], [], []>} : vector<32x128xf32>, vector<128x128xf32>, vector<32x128xf32> -> vector<32x128xf32>
    %9 = arith.addf %5, %8 : vector<32x128xf32>
    %c64_i32 = arith.constant 64 : i32
    %10 = tpu.dynamic_rotate %9 by %c64_i32 dim 1 : vector<32x128xf32>, i32 -> vector<32x128xf32>
    %c0_9 = arith.constant 0 : index
    %c0_10 = arith.constant 0 : index
    %11 = vector.load %arg3[%c0_9, %c0_10] : memref<32x128xf32, #tpu.memory_space<vmem>>, vector<32x128xf32>
    %12 = arith.mulf %9, %11 : vector<32x128xf32>
    %c0_11 = arith.constant 0 : index
    %c0_12 = arith.constant 0 : index
    %13 = vector.load %arg4[%c0_11, %c0_12] : memref<32x128xf32, #tpu.memory_space<vmem>>, vector<32x128xf32>
    %14 = arith.mulf %10, %13 : vector<32x128xf32>
    %15 = arith.addf %12, %14 : vector<32x128xf32>
    %c0_13 = arith.constant 0 : index
    %c0_14 = arith.constant 0 : index
    %16 = vector.load %arg11[%c0_13, %c0_14] : memref<128x32xf32, #tpu.memory_space<vmem>>, vector<128x32xf32>
    %cst_15 = arith.constant dense<0.000000e+00> : vector<32x32xf32>
    %17 = tpu.matmul %15, %16, %cst_15 {dimension_numbers = #tpu.dot_dimension_numbers<[1], [0], [0], [1], [0, 0, 1, 1], [], []>} : vector<32x128xf32>, vector<128x32xf32>, vector<32x32xf32> -> vector<32x32xf32>
    %18 = tpu.iota {dimensions = array<i32: 0>} : vector<32x1xi32>
    %c16_i32 = arith.constant 16 : i32
    %c0_i32 = arith.constant 0 : i32
    %19 = arith.cmpi eq, %c16_i32, %c0_i32 : i32
    %c1_i32 = arith.constant 1 : i32
    %20 = arith.select %19, %c1_i32, %c16_i32 : i32
    %21 = vector.broadcast %20 : i32 to vector<32x1xi32>
    %22 = arith.remsi %18, %21 : vector<32x1xi32>
    %c0_i32_16 = arith.constant 0 : i32
    %23 = vector.broadcast %c0_i32_16 : i32 to vector<32x1xi32>
    %24 = arith.cmpi ne, %22, %23 : vector<32x1xi32>
    %c0_i32_17 = arith.constant 0 : i32
    %25 = vector.broadcast %c0_i32_17 : i32 to vector<32x1xi32>
    %26 = arith.cmpi slt, %22, %25 : vector<32x1xi32>
    %c0_i32_18 = arith.constant 0 : i32
    %27 = arith.cmpi slt, %20, %c0_i32_18 : i32
    %28 = vector.broadcast %27 : i1 to vector<32x1xi1>
    %29 = vector.broadcast %28 : vector<32x1xi1> to vector<32x1xi1>
    %30 = arith.xori %26, %29 : vector<32x1xi1>
    %31 = arith.andi %30, %24 : vector<32x1xi1>
    %32 = vector.broadcast %20 : i32 to vector<32x1xi32>
    %33 = arith.addi %22, %32 : vector<32x1xi32>
    %34 = arith.select %31, %33, %22 : vector<32x1xi1>, vector<32x1xi32>
    %c0_i32_19 = arith.constant 0 : i32
    %35 = vector.broadcast %c0_i32_19 : i32 to vector<32x1xi32>
    %36 = arith.cmpi ne, %34, %35 : vector<32x1xi32>
    %37 = arith.extui %36 : vector<32x1xi1> to vector<32x1xi32>
    %38 = arith.sitofp %37 : vector<32x1xi32> to vector<32x1xf32>
    %c15_i32 = arith.constant 15 : i32
    %39 = vector.broadcast %c15_i32 : i32 to vector<32x1xi32>
    %40 = arith.cmpi ne, %34, %39 : vector<32x1xi32>
    %41 = arith.extui %40 : vector<32x1xi1> to vector<32x1xi32>
    %42 = arith.sitofp %41 : vector<32x1xi32> to vector<32x1xf32>
    %c1_i32_20 = arith.constant 1 : i32
    %43 = tpu.dynamic_rotate %17 by %c1_i32_20 dim 0 : vector<32x32xf32>, i32 -> vector<32x32xf32>
    %44 = vector.broadcast %38 : vector<32x1xf32> to vector<32x32xf32>
    %45 = arith.mulf %43, %44 : vector<32x32xf32>
    %c31_i32 = arith.constant 31 : i32
    %46 = tpu.dynamic_rotate %17 by %c31_i32 dim 0 : vector<32x32xf32>, i32 -> vector<32x32xf32>
    %47 = vector.broadcast %42 : vector<32x1xf32> to vector<32x32xf32>
    %48 = arith.mulf %46, %47 : vector<32x32xf32>
    %c0_21 = arith.constant 0 : index
    %c0_22 = arith.constant 0 : index
    %c0_23 = arith.constant 0 : index
    %49 = vector.load %arg13[%c0_21, %c0_22, %c0_23] : memref<3x32x64xf32, #tpu.memory_space<vmem>>, vector<1x32x64xf32>
    %50 = vector.shape_cast %49 : vector<1x32x64xf32> to vector<32x64xf32>
    %cst_24 = arith.constant dense<0.000000e+00> : vector<32x64xf32>
    %51 = tpu.matmul %45, %50, %cst_24 {dimension_numbers = #tpu.dot_dimension_numbers<[1], [0], [0], [1], [0, 0, 1, 1], [], []>} : vector<32x32xf32>, vector<32x64xf32>, vector<32x64xf32> -> vector<32x64xf32>
    %c1 = arith.constant 1 : index
    %c0_25 = arith.constant 0 : index
    %c0_26 = arith.constant 0 : index
    %52 = vector.load %arg13[%c1, %c0_25, %c0_26] : memref<3x32x64xf32, #tpu.memory_space<vmem>>, vector<1x32x64xf32>
    %53 = vector.shape_cast %52 : vector<1x32x64xf32> to vector<32x64xf32>
    %cst_27 = arith.constant dense<0.000000e+00> : vector<32x64xf32>
    %54 = tpu.matmul %17, %53, %cst_27 {dimension_numbers = #tpu.dot_dimension_numbers<[1], [0], [0], [1], [0, 0, 1, 1], [], []>} : vector<32x32xf32>, vector<32x64xf32>, vector<32x64xf32> -> vector<32x64xf32>
    %55 = arith.addf %51, %54 : vector<32x64xf32>
    %c2 = arith.constant 2 : index
    %c0_28 = arith.constant 0 : index
    %c0_29 = arith.constant 0 : index
    %56 = vector.load %arg13[%c2, %c0_28, %c0_29] : memref<3x32x64xf32, #tpu.memory_space<vmem>>, vector<1x32x64xf32>
    %57 = vector.shape_cast %56 : vector<1x32x64xf32> to vector<32x64xf32>
    %cst_30 = arith.constant dense<0.000000e+00> : vector<32x64xf32>
    %58 = tpu.matmul %48, %57, %cst_30 {dimension_numbers = #tpu.dot_dimension_numbers<[1], [0], [0], [1], [0, 0, 1, 1], [], []>} : vector<32x32xf32>, vector<32x64xf32>, vector<32x64xf32> -> vector<32x64xf32>
    %59 = arith.addf %55, %58 : vector<32x64xf32>
    %c0_31 = arith.constant 0 : index
    %c0_32 = arith.constant 0 : index
    %60 = vector.load %arg15[%c0_31, %c0_32] : memref<1x64xf32, #tpu.memory_space<vmem>>, vector<1x64xf32>
    %61 = vector.broadcast %60 : vector<1x64xf32> to vector<32x64xf32>
    %62 = arith.addf %59, %61 : vector<32x64xf32>
    %cst_33 = arith.constant 0.000000e+00 : f32
    %63 = vector.broadcast %cst_33 : f32 to vector<32x64xf32>
    %64 = arith.maximumf %62, %63 : vector<32x64xf32>
    %c1_i32_34 = arith.constant 1 : i32
    %65 = tpu.dynamic_rotate %64 by %c1_i32_34 dim 0 : vector<32x64xf32>, i32 -> vector<32x64xf32>
    %66 = vector.broadcast %38 : vector<32x1xf32> to vector<32x64xf32>
    %67 = arith.mulf %65, %66 : vector<32x64xf32>
    %c31_i32_35 = arith.constant 31 : i32
    %68 = tpu.dynamic_rotate %64 by %c31_i32_35 dim 0 : vector<32x64xf32>, i32 -> vector<32x64xf32>
    %69 = vector.broadcast %42 : vector<32x1xf32> to vector<32x64xf32>
    %70 = arith.mulf %68, %69 : vector<32x64xf32>
    %c0_36 = arith.constant 0 : index
    %c0_37 = arith.constant 0 : index
    %c0_38 = arith.constant 0 : index
    %71 = vector.load %arg14[%c0_36, %c0_37, %c0_38] : memref<3x64x32xf32, #tpu.memory_space<vmem>>, vector<1x64x32xf32>
    %72 = vector.shape_cast %71 : vector<1x64x32xf32> to vector<64x32xf32>
    %cst_39 = arith.constant dense<0.000000e+00> : vector<32x32xf32>
    %73 = tpu.matmul %67, %72, %cst_39 {dimension_numbers = #tpu.dot_dimension_numbers<[1], [0], [0], [1], [0, 0, 1, 1], [], []>} : vector<32x64xf32>, vector<64x32xf32>, vector<32x32xf32> -> vector<32x32xf32>
    %c1_40 = arith.constant 1 : index
    %c0_41 = arith.constant 0 : index
    %c0_42 = arith.constant 0 : index
    %74 = vector.load %arg14[%c1_40, %c0_41, %c0_42] : memref<3x64x32xf32, #tpu.memory_space<vmem>>, vector<1x64x32xf32>
    %75 = vector.shape_cast %74 : vector<1x64x32xf32> to vector<64x32xf32>
    %cst_43 = arith.constant dense<0.000000e+00> : vector<32x32xf32>
    %76 = tpu.matmul %64, %75, %cst_43 {dimension_numbers = #tpu.dot_dimension_numbers<[1], [0], [0], [1], [0, 0, 1, 1], [], []>} : vector<32x64xf32>, vector<64x32xf32>, vector<32x32xf32> -> vector<32x32xf32>
    %77 = arith.addf %73, %76 : vector<32x32xf32>
    %c2_44 = arith.constant 2 : index
    %c0_45 = arith.constant 0 : index
    %c0_46 = arith.constant 0 : index
    %78 = vector.load %arg14[%c2_44, %c0_45, %c0_46] : memref<3x64x32xf32, #tpu.memory_space<vmem>>, vector<1x64x32xf32>
    %79 = vector.shape_cast %78 : vector<1x64x32xf32> to vector<64x32xf32>
    %cst_47 = arith.constant dense<0.000000e+00> : vector<32x32xf32>
    %80 = tpu.matmul %70, %79, %cst_47 {dimension_numbers = #tpu.dot_dimension_numbers<[1], [0], [0], [1], [0, 0, 1, 1], [], []>} : vector<32x64xf32>, vector<64x32xf32>, vector<32x32xf32> -> vector<32x32xf32>
    %81 = arith.addf %77, %80 : vector<32x32xf32>
    %c0_48 = arith.constant 0 : index
    %c0_49 = arith.constant 0 : index
    %82 = vector.load %arg16[%c0_48, %c0_49] : memref<1x32xf32, #tpu.memory_space<vmem>>, vector<1x32xf32>
    %83 = vector.broadcast %82 : vector<1x32xf32> to vector<32x32xf32>
    %84 = arith.addf %81, %83 : vector<32x32xf32>
    %c0_50 = arith.constant 0 : index
    %c0_51 = arith.constant 0 : index
    %85 = vector.load %arg12[%c0_50, %c0_51] : memref<32x128xf32, #tpu.memory_space<vmem>>, vector<32x128xf32>
    %cst_52 = arith.constant dense<0.000000e+00> : vector<32x128xf32>
    %86 = tpu.matmul %84, %85, %cst_52 {dimension_numbers = #tpu.dot_dimension_numbers<[1], [0], [0], [1], [0, 0, 1, 1], [], []>} : vector<32x32xf32>, vector<32x128xf32>, vector<32x128xf32> -> vector<32x128xf32>
    %c64_i32_53 = arith.constant 64 : i32
    %87 = tpu.dynamic_rotate %86 by %c64_i32_53 dim 1 : vector<32x128xf32>, i32 -> vector<32x128xf32>
    %c0_54 = arith.constant 0 : index
    %c0_55 = arith.constant 0 : index
    %88 = vector.load %arg3[%c0_54, %c0_55] : memref<32x128xf32, #tpu.memory_space<vmem>>, vector<32x128xf32>
    %89 = arith.mulf %86, %88 : vector<32x128xf32>
    %c0_56 = arith.constant 0 : index
    %c0_57 = arith.constant 0 : index
    %90 = vector.load %arg4[%c0_56, %c0_57] : memref<32x128xf32, #tpu.memory_space<vmem>>, vector<32x128xf32>
    %91 = arith.mulf %87, %90 : vector<32x128xf32>
    %92 = arith.subf %89, %91 : vector<32x128xf32>
    %c0_58 = arith.constant 0 : index
    %c0_59 = arith.constant 0 : index
    %93 = vector.load %arg8[%c0_58, %c0_59] : memref<64x32xf32, #tpu.memory_space<vmem>>, vector<64x32xf32>
    %cst_60 = arith.constant dense<0.000000e+00> : vector<64x128xf32>
    %94 = tpu.matmul %93, %92, %cst_60 {dimension_numbers = #tpu.dot_dimension_numbers<[1], [0], [0], [1], [0, 0, 1, 1], [], []>} : vector<64x32xf32>, vector<32x128xf32>, vector<64x128xf32> -> vector<64x128xf32>
    %95 = vector.extract_strided_slice %94 {offsets = [0, 0], sizes = [32, 128], strides = [1, 1]} : vector<64x128xf32> to vector<32x128xf32>
    %c0_61 = arith.constant 0 : index
    %c0_62 = arith.constant 0 : index
    %96 = vector.load %arg9[%c0_61, %c0_62] : memref<128x128xf32, #tpu.memory_space<vmem>>, vector<128x128xf32>
    %cst_63 = arith.constant dense<0.000000e+00> : vector<32x128xf32>
    %97 = tpu.matmul %95, %96, %cst_63 {dimension_numbers = #tpu.dot_dimension_numbers<[1], [0], [0], [1], [0, 0, 1, 1], [], []>} : vector<32x128xf32>, vector<128x128xf32>, vector<32x128xf32> -> vector<32x128xf32>
    %98 = vector.extract_strided_slice %94 {offsets = [32, 0], sizes = [32, 128], strides = [1, 1]} : vector<64x128xf32> to vector<32x128xf32>
    %c0_64 = arith.constant 0 : index
    %c0_65 = arith.constant 0 : index
    %99 = vector.load %arg10[%c0_64, %c0_65] : memref<128x128xf32, #tpu.memory_space<vmem>>, vector<128x128xf32>
    %cst_66 = arith.constant dense<0.000000e+00> : vector<32x128xf32>
    %100 = tpu.matmul %98, %99, %cst_66 {dimension_numbers = #tpu.dot_dimension_numbers<[1], [0], [0], [1], [0, 0, 1, 1], [], []>} : vector<32x128xf32>, vector<128x128xf32>, vector<32x128xf32> -> vector<32x128xf32>
    %101 = arith.addf %97, %100 : vector<32x128xf32>
    %c0_67 = arith.constant 0 : index
    %c0_68 = arith.constant 0 : index
    %102 = vector.load %arg2[%c0_67, %c0_68] : memref<32x128xf32, #tpu.memory_space<vmem>>, vector<32x128xf32>
    %c0_69 = arith.constant 0 : index
    %c0_70 = arith.constant 0 : index
    %103 = vector.load %arg1[%c0_69, %c0_70] : memref<32x128xf32, #tpu.memory_space<vmem>>, vector<32x128xf32>
    %104 = arith.subf %0, %103 : vector<32x128xf32>
    %105 = arith.mulf %102, %104 : vector<32x128xf32>
    %106 = arith.subf %0, %105 : vector<32x128xf32>
    %107 = arith.subf %106, %101 : vector<32x128xf32>
    %c0_71 = arith.constant 0 : index
    %c0_72 = arith.constant 0 : index
    %108 = vector.load %arg17[%c0_71, %c0_72] : memref<32x128xf32, #tpu.memory_space<vmem>>, vector<32x128xf32>
    tpu.vector_store %arg17[%c0_71, %c0_72], %107 {strides = array<i32>} : memref<32x128xf32, #tpu.memory_space<vmem>>, vector<32x128xf32>,
    return
  }
}

</mosaic_0001>

<bundles_post_ra>
// kernel: neg.14
= control target key start
LH: loop header
LB: loop body
LE: loop exit
PB: predicated region body
PF: predicated region fallthrough
CT: control target
= control target key end

     0   :  { %s136_s0 = inlined_call_operand.vmem [shape: f32[64,64], index: 0, kind: input, shape index: {}]   ;;  %s137_s1 = inlined_call_operand.vmem [shape: f32[64,64], index: 1, kind: output, shape index: {}]  }
   0x1   :  { %v2_v0 = vld [vmem:[%s136_s0] sm:$0xff]  ;;  %v64_v1 = vld [vmem:[%s136_s0 + $0x8] sm:$0xff]  ;;  %v66_v2 = vld [vmem:[%s136_s0 + $0x10] sm:$0xff] }
   0x2   :  { %v5_v3 = vxor.u32 2147483648, %v2_v0  ;;  %v12_v4 = vxor.u32 2147483648, %v64_v1  ;;  %v20_v5 = vxor.u32 2147483648, %v66_v2  ;;  %v68_v6 = vld [vmem:[%s136_s0 + $0x18] sm:$0xff]  ;;  %v70_v7 = vld [vmem:[%s136_s0 + $0x20] sm:$0xff]  ;;  %v72_v8 = vld [vmem:[%s136_s0 + $0x28] sm:$0xff] }
   0x3   :  { %v28_v9 = vxor.u32 2147483648, %v68_v6  ;;  %v36_v10 = vxor.u32 2147483648, %v70_v7  ;;  %v44_v11 = vxor.u32 2147483648, %v72_v8  ;;  %v74_v12 = vld [vmem:[%s136_s0 + $0x30] sm:$0xff]  ;;  %v76_v13 = vld [vmem:[%s136_s0 + $0x38] sm:$0xff] }
   0x4   :  { %7 = vst [vmem:[%s137_s1] sm:$0xff] %v5_v3  ;;  %65 = vst [vmem:[%s137_s1 + $0x8] sm:$0xff] %v12_v4  ;;  %v52_v14 = vxor.u32 2147483648, %v74_v12  ;;  %v60_v15 = vxor.u32 2147483648, %v76_v13 }
   0x5   :  { %67 = vst [vmem:[%s137_s1 + $0x10] sm:$0xff] %v20_v5  ;;  %69 = vst [vmem:[%s137_s1 + $0x18] sm:$0xff] %v28_v9 }
   0x6   :  { %71 = vst [vmem:[%s137_s1 + $0x20] sm:$0xff] %v36_v10  ;;  %73 = vst [vmem:[%s137_s1 + $0x28] sm:$0xff] %v44_v11 }
   0x7   :  { %75 = vst [vmem:[%s137_s1 + $0x30] sm:$0xff] %v52_v14  ;;  %77 = vst [vmem:[%s137_s1 + $0x38] sm:$0xff] %v60_v15 }

// kernel: neg.9
= control target key start
LH: loop header
LB: loop body
LE: loop exit
PB: predicated region body
PF: predicated region fallthrough
CT: control target
= control target key end

     0   :  { %s72_s0 = inlined_call_operand.vmem [shape: f32[32,64], index: 0, kind: input, shape index: {}]   ;;  %s73_s1 = inlined_call_operand.vmem [shape: f32[32,64], index: 1, kind: output, shape index: {}]  }
   0x1   :  { %v2_v0 = vld [vmem:[%s72_s0] sm:$0xff]  ;;  %v32_v1 = vld [vmem:[%s72_s0 + $0x8] sm:$0xff]  ;;  %v34_v2 = vld [vmem:[%s72_s0 + $0x10] sm:$0xff] }
   0x2   :  { %v5_v3 = vxor.u32 2147483648, %v2_v0  ;;  %v12_v4 = vxor.u32 2147483648, %v32_v1  ;;  %v20_v5 = vxor.u32 2147483648, %v34_v2  ;;  %v36_v6 = vld [vmem:[%s72_s0 + $0x18] sm:$0xff] }
   0x3   :  { %v28_v7 = vxor.u32 2147483648, %v36_v6 }
   0x4   :  { %7 = vst [vmem:[%s73_s1] sm:$0xff] %v5_v3  ;;  %33 = vst [vmem:[%s73_s1 + $0x8] sm:$0xff] %v12_v4 }
   0x5   :  { %35 = vst [vmem:[%s73_s1 + $0x10] sm:$0xff] %v20_v5  ;;  %37 = vst [vmem:[%s73_s1 + $0x18] sm:$0xff] %v28_v7 }

// kernel: varnet_block_forward.1
= control target key start
LH: loop header
LB: loop body
LE: loop exit
PB: predicated region body
PF: predicated region fallthrough
CT: control target
= control target key end

     0   :  { %vm68_vm0 = vcmask 261120   ;;  %s2429_s18 = smov 64   ;;  %vm997_vm7 = vcmask 523264   ;;  %s3175_s0 = inlined_call_operand.vmem [shape: f32[32,128], index: 0, kind: input, shape index: {}, may-alias: {0,17}]   ;;  %s3176_s5 = inlined_call_operand.vmem [shape: f32[64,32], index: 5, kind: input, shape index: {}]   ;;  %s3177_s7 = inlined_call_operand.vmem [shape: f32[128,128], index: 7, kind: input, shape index: {}]   ;;  %s3178_s6 = inlined_call_operand.vmem [shape: f32[128,128], index: 6, kind: input, shape index: {}]   ;;  %s3179_s11 = inlined_call_operand.vmem [shape: f32[128,32], index: 11, kind: input, shape index: {}]   ;;  %s3180_s13 = inlined_call_operand.vmem [shape: f32[3,32,64], index: 13, kind: input, shape index: {}]   ;;  %s3181_s4 = inlined_call_operand.vmem [shape: f32[32,128], index: 4, kind: input, shape index: {}]   ;;  %s3182_s3 = inlined_call_operand.vmem [shape: f32[32,128], index: 3, kind: input, shape index: {}]   ;;  %s3183_s14 = inlined_call_operand.vmem [shape: f32[3,64,32], index: 14, kind: input, shape index: {}]   ;;  %s3184_s15 = inlined_call_operand.vmem [shape: f32[1,64], index: 15, kind: input, shape index: {}]   ;;  %s3185_s12 = inlined_call_operand.vmem [shape: f32[32,128], index: 12, kind: input, shape index: {}]   ;;  %s3186_s16 = inlined_call_operand.vmem [shape: f32[1,32], index: 16, kind: input, shape index: {}]   ;;  %s3187_s8 = inlined_call_operand.vmem [shape: f32[64,32], index: 8, kind: input, shape index: {}]   ;;  %s3188_s10 = inlined_call_operand.vmem [shape: f32[128,128], index: 10, kind: input, shape index: {}]   ;;  %s3189_s9 = inlined_call_operand.vmem [shape: f32[128,128], index: 9, kind: input, shape index: {}]   ;;  %s3190_s1 = inlined_call_operand.vmem [shape: f32[32,128], index: 1, kind: input, shape index: {}]   ;;  %s3191_s2 = inlined_call_operand.vmem [shape: f32[32,128], index: 2, kind: input, shape index: {}]   ;;  %s3192_s17 = inlined_call_operand.vmem [shape: f32[32,128], index: 17, kind: output, shape index: {}, may-alias: {0,17}]  }
   0x1   :  { %3195 = sst [smem:[#allocation2_spill]] %s3175_s0  ;;  %v229_v5 = vld [vmem:[%s3177_s7 + $0x78] sm:$0xff]  ;;  %v228_v8 = vld [vmem:[%s3177_s7 + $0x70] sm:$0xff]  ;;  %v227_v11 = vld [vmem:[%s3177_s7 + $0x68] sm:$0xff] }
   0x2   :  { %3196 = sst [smem:[#allocation3_spill]] %s3176_s5  ;;  %v213_v7 = vld [vmem:[%s3178_s6 + $0x78] sm:$0xff]  ;;  %2091 = vmatprep.subr.mxu1 %v229_v5  ;;  %v212_v10 = vld [vmem:[%s3178_s6 + $0x70] sm:$0xff]  ;;  %v211_v13 = vld [vmem:[%s3178_s6 + $0x68] sm:$0xff] }
   0x3   :  { %s3197_s26 = sld [smem:[#allocation2_spill]]  ;;  %2092 = vmatpush3.msra.mxu1 %v229_v5  ;;  %v210_v15 = vld [vmem:[%s3178_s6 + $0x60] sm:$0xff]  ;;  %v209_v18 = vld [vmem:[%s3178_s6 + $0x58] sm:$0xff]  ;;  %v208_v20 = vld [vmem:[%s3178_s6 + $0x50] sm:$0xff] }
   0x4   :  { %s3198_s30 = sld [smem:[#allocation3_spill]]  ;;  %2093 = vmatprep.subr.mxu1 %v228_v8  ;;  %v226_v16 = vld [vmem:[%s3177_s7 + $0x60] sm:$0xff]  ;;  %v225_v21 = vld [vmem:[%s3177_s7 + $0x58] sm:$0xff]  ;;  %v207_v23 = vld [vmem:[%s3178_s6 + $0x48] sm:$0xff] }
   0x5   :  { %2094 = vmatpush3.msra.mxu1 %v228_v8  ;;  %v206_v24 = vld [vmem:[%s3178_s6 + $0x40] sm:$0xff]  ;;  %v224_v25 = vld [vmem:[%s3177_s7 + $0x50] sm:$0xff]  ;;  %v205_v26 = vld [vmem:[%s3178_s6 + $0x38] sm:$0xff] }
   0x6   :  { %2095 = vmatprep.subr.mxu1 %v227_v11  ;;  %v223_v27 = vld [vmem:[%s3177_s7 + $0x48] sm:$0xff]  ;;  %v204_v28 = vld [vmem:[%s3178_s6 + $0x30] sm:$0xff]  ;;  %v222_v29 = vld [vmem:[%s3177_s7 + $0x40] sm:$0xff] }
   0x7   :  { %2096 = vmatpush3.msra.mxu1 %v227_v11  ;;  %v203_v30 = vld [vmem:[%s3178_s6 + $0x28] sm:$0xff]  ;;  %v221_v31 = vld [vmem:[%s3177_s7 + $0x38] sm:$0xff]  ;;  %v202_v32 = vld [vmem:[%s3178_s6 + $0x20] sm:$0xff] }
   0x8   :  { %2097 = vmatprep.subr.mxu1 %v226_v16  ;;  %v220_v33 = vld [vmem:[%s3177_s7 + $0x30] sm:$0xff]  ;;  %v201_v34 = vld [vmem:[%s3178_s6 + $0x18] sm:$0xff]  ;;  %v219_v36 = vld [vmem:[%s3177_s7 + $0x28] sm:$0xff] }
   0x9   :  { %v59_v0 = vld [vmem:[%s3197_s26 + $0x18] sm:$0xff]  ;;  %v58_v1 = vld [vmem:[%s3197_s26 + $0x10] sm:$0xff]  ;;  %v57_v3 = vld [vmem:[%s3197_s26 + $0x8] sm:$0xff]  ;;  %2098 = vmatpush3.msra.mxu1 %v226_v16 }
   0xa   :  { %2071 = vmatprep.subr.mxu0 %v59_v0  ;;  %v60_v2 = vld [vmem:[%s3198_s30] sm:$0xff]  ;;  %v61_v6 = vld [vmem:[%s3198_s30 + $0x8] sm:$0xff]  ;;  %v62_v9 = vld [vmem:[%s3198_s30 + $0x10] sm:$0xff]  ;;  %2099 = vmatprep.subr.mxu1 %v225_v21 }
   0xb   :  { %2072 = vmatpush3.msra.mxu0 %v59_v0  ;;  %2079 = vmatprep.mubr.msk.f32.mxu0 %vm68_vm0, %v60_v2  ;;  %v56_v4 = vld [vmem:[%s3197_s26] sm:$0xff]  ;;  %v63_v12 = vld [vmem:[%s3198_s30 + $0x18] sm:$0xff]  ;;  %v65_v17 = vld [vmem:[%s3198_s30 + $0x28] sm:$0xff] }
   0xc   :  { %2073 = vmatprep.subr.mxu0 %v58_v1  ;;  %v64_v14 = vld [vmem:[%s3198_s30 + $0x20] sm:$0xff]  ;;  %v66_v19 = vld [vmem:[%s3198_s30 + $0x30] sm:$0xff]  ;;  %v67_v22 = vld [vmem:[%s3198_s30 + $0x38] sm:$0xff]  ;;  %2100 = vmatpush3.msra.mxu1 %v225_v21 }
   0xd   :  { %2074 = vmatpush3.msra.mxu0 %v58_v1  ;;  %2101 = vmatprep.subr.mxu1 %v224_v25  ;;  %v200_v35 = vld [vmem:[%s3178_s6 + $0x10] sm:$0xff]  ;;  %v199_v37 = vld [vmem:[%s3178_s6 + $0x8] sm:$0xff]  ;;  %v218_v38 = vld [vmem:[%s3177_s7 + $0x20] sm:$0xff] }
   0xe   :  { %2075 = vmatprep.subr.mxu0 %v57_v3  ;;  %2102 = vmatpush3.msra.mxu1 %v224_v25  ;;  %v198_v39 = vld [vmem:[%s3178_s6] sm:$0xff]  ;;  %v217_v40 = vld [vmem:[%s3177_s7 + $0x18] sm:$0xff]  ;;  %v216_v41 = vld [vmem:[%s3177_s7 + $0x10] sm:$0xff] }
   0xf   :  { %2076 = vmatpush3.msra.mxu0 %v57_v3  ;;  %2103 = vmatprep.subr.mxu1 %v223_v27  ;;  %v215_v42 = vld [vmem:[%s3177_s7 + $0x8] sm:$0xff]  ;;  %v214_v43 = vld [vmem:[%s3177_s7] sm:$0xff]  ;;  %v443_v52 = vld [vmem:[%s3179_s11 + $0x78] sm:$0xff] }
  0x10   :  { %2077 = vmatprep.subr.mxu0 %v56_v4  ;;  %2104 = vmatpush3.msra.mxu1 %v223_v27  ;;  %v442_v53 = vld [vmem:[%s3179_s11 + $0x70] sm:$0xff]  ;;  %v441_v54 = vld [vmem:[%s3179_s11 + $0x68] sm:$0xff]  ;;  %v440_v55 = vld [vmem:[%s3179_s11 + $0x60] sm:$0xff] }
  0x11   :  { %2078 = vmatpush3.msra.mxu0 %v56_v4  ;;  %2105 = vmatprep.subr.mxu1 %v222_v29  ;;  %v439_v56 = vld [vmem:[%s3179_s11 + $0x58] sm:$0xff]  ;;  %v438_v57 = vld [vmem:[%s3179_s11 + $0x50] sm:$0xff]  ;;  %v437_v58 = vld [vmem:[%s3179_s11 + $0x48] sm:$0xff] }
  0x12   :  { %2080 = vmatmul.mubr.msk.f32.vlgmr.msra.gmra.mxu0 %vm68_vm0, %v61_v6  ;;  %2129 = vmatprep.subr.mxu0 %v213_v7  ;;  %v436_v59 = vld [vmem:[%s3179_s11 + $0x40] sm:$0xff]  ;;  %v435_v60 = vld [vmem:[%s3179_s11 + $0x38] sm:$0xff]  ;;  %v434_v61 = vld [vmem:[%s3179_s11 + $0x30] sm:$0xff] }
  0x13   :  { %2082 = vmatprep.mubr.msk.f32.mxu0 %vm68_vm0, %v62_v9  ;;  %2130 = vmatpush3.msra.mxu0 %v213_v7  ;;  %v433_v62 = vld [vmem:[%s3179_s11 + $0x28] sm:$0xff]  ;;  %v432_v63 = vld [vmem:[%s3179_s11 + $0x20] sm:$0xff]  ;;  %v431_v0 = vld [vmem:[%s3179_s11 + $0x18] sm:$0xff] }
  0x14   :  { %2131 = vmatprep.subr.mxu0 %v212_v10  ;;  %2106 = vmatpush3.msra.mxu1 %v222_v29  ;;  %v430_v1 = vld [vmem:[%s3179_s11 + $0x10] sm:$0xff]  ;;  %v429_v3 = vld [vmem:[%s3179_s11 + $0x8] sm:$0xff]  ;;  %v428_v4 = vld [vmem:[%s3179_s11] sm:$0xff] }
  0x15   :  { %2132 = vmatpush3.msra.mxu0 %v212_v10  ;;  %2107 = vmatprep.subr.mxu1 %v221_v31  ;;  %v1820_v11 = vld [vmem:[%s3180_s13 + $0x38] sm:$0xff]  ;;  %v2732_v21 = vld [vmem:[%s3182_s3 + $0x8] sm:$0xff] }
  0x16   :  { %2083 = vmatmul.mubr.msk.f32.gmra.mxu0 %vm68_vm0, %v63_v12  ;;  %2133 = vmatprep.subr.mxu0 %v211_v13  ;;  %v1819_v12 = vld [vmem:[%s3180_s13 + $0x30] sm:$0xff]  ;;  %v2744_v25 = vld [vmem:[%s3181_s4 + $0x8] sm:$0xff] }
  0x17   :  { %2085 = vmatprep.mubr.msk.f32.mxu0 %vm68_vm0, %v64_v14  ;;  %2134 = vmatpush3.msra.mxu0 %v211_v13 }
  0x18   :  { %2135 = vmatprep.subr.mxu0 %v210_v15  ;;  %2108 = vmatpush3.msra.mxu1 %v221_v31 }
  0x19   :  { %2136 = vmatpush3.msra.mxu0 %v210_v15  ;;  %2109 = vmatprep.subr.mxu1 %v220_v33 }
  0x1a   :  { %2086 = vmatmul.mubr.msk.f32.gmra.mxu0 %vm68_vm0, %v65_v17  ;;  %2137 = vmatprep.subr.mxu0 %v209_v18 }
  0x1b   :  { %2088 = vmatprep.mubr.msk.f32.mxu0 %vm68_vm0, %v66_v19  ;;  %2138 = vmatpush3.msra.mxu0 %v209_v18  ;;  %v2722_v18 = vld [vmem:[%s3182_s3] sm:$0xff] }
  0x1c   :  { %2139 = vmatprep.subr.mxu0 %v208_v20  ;;  %2110 = vmatpush3.msra.mxu1 %v220_v33  ;;  %v2727_v19 = vld [vmem:[%s3181_s4] sm:$0xff] }
  0x1d   :  { %2140 = vmatpush3.msra.mxu0 %v208_v20  ;;  %2111 = vmatprep.subr.mxu1 %v219_v36 }
  0x1e   :  { %2089 = vmatmul.mubr.msk.f32.gmra.mxu0 %vm68_vm0, %v67_v22  ;;  %2141 = vmatprep.subr.mxu0 %v207_v23 }
  0x1f   :  { %2142 = vmatpush3.msra.mxu0 %v207_v23  ;;  %2112 = vmatpush3.msra.mxu1 %v219_v36 }
  0x20   :  { %2143 = vmatprep.subr.mxu0 %v206_v24  ;;  %2113 = vmatprep.subr.mxu1 %v218_v38 }
  0x21   :  { %2144 = vmatpush3.msra.mxu0 %v206_v24  ;;  %2114 = vmatpush3.msra.mxu1 %v218_v38  ;;  %v2739_v24 = vld [vmem:[%s3182_s3 + $0x10] sm:$0xff] }
  0x22   :  { %2145 = vmatprep.subr.mxu0 %v205_v26  ;;  %2115 = vmatprep.subr.mxu1 %v217_v40 }
  0x23   :  { %2146 = vmatpush3.msra.mxu0 %v205_v26  ;;  %2116 = vmatpush3.msra.mxu1 %v217_v40  ;;  %v2749_v26 = vld [vmem:[%s3181_s4 + $0x10] sm:$0xff] }
  0x24   :  { %2147 = vmatprep.subr.mxu0 %v204_v28  ;;  %2117 = vmatprep.subr.mxu1 %v216_v41 }
  0x25   :  { %2148 = vmatpush3.msra.mxu0 %v204_v28  ;;  %2118 = vmatpush3.msra.mxu1 %v216_v41 }
  0x26   :  { %2149 = vmatprep.subr.mxu0 %v203_v30  ;;  %2119 = vmatprep.subr.mxu1 %v215_v42 }
  0x27   :  { %2150 = vmatpush3.msra.mxu0 %v203_v30  ;;  %2120 = vmatpush3.msra.mxu1 %v215_v42  ;;  %v1818_v42 = vld [vmem:[%s3180_s13 + $0x28] sm:$0xff] }
  0x28   :  { %2151 = vmatprep.subr.mxu0 %v202_v32  ;;  %2121 = vmatprep.subr.mxu1 %v214_v43 }
  0x29   :  { %2152 = vmatpush3.msra.mxu0 %v202_v32  ;;  %2122 = vmatpush3.msra.mxu1 %v214_v43  ;;  %v1817_v43 = vld [vmem:[%s3180_s13 + $0x20] sm:$0xff] }
  0x2a   :  { %2153 = vmatprep.subr.mxu0 %v201_v34  ;;  %2167 = vmatprep.subr.mxu1 %v443_v52 }
  0x2b   :  { %2154 = vmatpush3.msra.mxu0 %v201_v34  ;;  %v2758_v34 = vld [vmem:[%s3182_s3 + $0x18] sm:$0xff] }
  0x2c   :  { %2155 = vmatprep.subr.mxu0 %v200_v35 }
  0x2d   :  { %2156 = vmatpush3.msra.mxu0 %v200_v35  ;;  %v2763_v35 = vld [vmem:[%s3181_s4 + $0x18] sm:$0xff] }
  0x2e   :  { %2157 = vmatprep.subr.mxu0 %v199_v37 }
  0x2f   :  { %2158 = vmatpush3.msra.mxu0 %v199_v37 }
  0x30   :  { %2159 = vmatprep.subr.mxu0 %v198_v39 }
  0x31   :  { %2160 = vmatpush3.msra.mxu0 %v198_v39 }
  0x32   :  { %2205 = vmatprep.subr.mxu0 %v1820_v11 }
  0xd2   :  { %v2081_v44 = vpop.f32.mrf.mxu0 }
  0xd4   :  { %v159_v45 = vpop.f32.mrf.mxu0 }
  0xd5   :  { %2161 = vmatprep.mubr.f32.mxu0 %v159_v45  ;;  %v529_v45 = vlaneseq }
  0xd6   :  { %v2084_v46 = vpop.f32.mrf.mxu0  ;;  %2162 = vmatmul.mubr.f32.vlgmr.msra.gmra.mxu0 %v2081_v44  ;;  %v635_v44 = vld [vmem:[%s3180_s13 + $0x18] sm:$0xff] }
  0xd7   :  { %2206 = vmatpush3.msra.mxu0 %v1820_v11  ;;  %v1831_v11 = vld [vmem:[%s3180_s13 + $0x50] sm:$0xff] }
  0xd8   :  { %v169_v47 = vpop.f32.mrf.mxu0  ;;  %2207 = vmatprep.subr.mxu0 %v1819_v12 }
  0xd9   :  { %2164 = vmatprep.mubr.f32.mxu0 %v169_v47  ;;  %2208 = vmatpush3.msra.mxu0 %v1819_v12 }
  0xda   :  { %v2087_v48 = vpop.f32.mrf.mxu0  ;;  %2165 = vmatmul.mubr.f32.gmra.mxu0 %v2084_v46  ;;  %2209 = vmatprep.subr.mxu0 %v1818_v42  ;;  %v2776_v46 = vshrl.u32 %v529_v45, 7  ;;  %v1838_v45 = vld [vmem:[%s3183_s14 + $0x40] sm:$0xff] }
  0xdb   :  { %2210 = vmatpush3.msra.mxu0 %v1818_v42  ;;  %v986_v42 = vld [vmem:[%s3183_s14 + $0x30] sm:$0xff] }
  0xdc   :  { %v179_v49 = vpop.f32.mrf.mxu0  ;;  %2211 = vmatprep.subr.mxu0 %v1817_v43  ;;  %v532_v47 = vadd.s32 16, %v2776_v46  ;;  %vm610_vm3 = vcmp.lt.s32.totalorder %v2776_v46, 1  ;;  %vm623_vm5 = vcmp.lt.s32.totalorder %v2776_v46, 7 }
  0xdd   :  { %2123 = vmatprep.mubr.f32.mxu1 %v179_v49  ;;  %2212 = vmatpush3.msra.mxu0 %v1817_v43  ;;  %v1839_v43 = vld [vmem:[%s3183_s14 + $0x48] sm:$0xff] }
  0xde   :  { %v2090_v50 = vpop.f32.mrf.mxu0  ;;  %2124 = vmatmul.mubr.f32.vlgmr.msra.gmra.mxu1 %v2087_v48  ;;  %2219 = vmatprep.subr.mxu0 %v635_v44  ;;  %v538_v48 = vand.u32 15, %v2776_v46 }
  0xdf   :  { %2168 = vmatpush3.msra.mxu1 %v443_v52  ;;  %v634_v52 = vld [vmem:[%s3180_s13 + $0x10] sm:$0xff] }
  0xe0   :  { %v189_v51 = vpop.f32.mrf.mxu0  ;;  %2169 = vmatprep.subr.mxu1 %v442_v53  ;;  %vm582_vm1 = vcmp.ne.s32.totalorder %v538_v48, 0  ;;  %v983_v48 = vld [vmem:[%s3183_s14 + $0x18] sm:$0xff] }
  0xe1   :  { %2126 = vmatprep.mubr.f32.mxu1 %v189_v51  ;;  %2170 = vmatpush3.msra.mxu1 %v442_v53 }
  0xe2   :  { %2127 = vmatmul.mubr.f32.gmra.mxu1 %v2090_v50  ;;  %2171 = vmatprep.subr.mxu1 %v441_v54  ;;  %v552_v50 = vand.u32 15, %v532_v47  ;;  %v984_v47 = vld [vmem:[%s3183_s14 + $0x20] sm:$0xff] }
  0xe3   :  { %2172 = vmatpush3.msra.mxu1 %v441_v54  ;;  %v531_v54 = vadd.s32 8, %v2776_v46 }
  0xe4   :  { %2173 = vmatprep.subr.mxu1 %v440_v55  ;;  %vm2791_vm2 = vcmp.ne.s32.totalorder %v552_v50, 0  ;;  %v982_v50 = vld [vmem:[%s3183_s14 + $0x10] sm:$0xff] }
  0xe5   :  { %2174 = vmatpush3.msra.mxu1 %v440_v55 }
  0xe6   :  { %2175 = vmatprep.subr.mxu1 %v439_v56 }
  0xe7   :  { %2176 = vmatpush3.msra.mxu1 %v439_v56 }
  0xe8   :  { %2177 = vmatprep.subr.mxu1 %v438_v57 }
  0xe9   :  { %2178 = vmatpush3.msra.mxu1 %v438_v57 }
  0xea   :  { %2179 = vmatprep.subr.mxu1 %v437_v58 }
  0xeb   :  { %2180 = vmatpush3.msra.mxu1 %v437_v58  ;;  %v633_v58 = vld [vmem:[%s3180_s13 + $0x8] sm:$0xff] }
  0xec   :  { %2181 = vmatprep.subr.mxu1 %v436_v59 }
  0xed   :  { %2182 = vmatpush3.msra.mxu1 %v436_v59  ;;  %v2430_v59 = vmov 0.0  }
  0xee   :  { %2183 = vmatprep.subr.mxu1 %v435_v60 }
  0xef   :  { %2184 = vmatpush3.msra.mxu1 %v435_v60  ;;  %v2800_v60 = vsel %vm582_vm1, 1.0, %v2430_v59 }
  0xf0   :  { %2185 = vmatprep.subr.mxu1 %v434_v61 }
  0xf1   :  { %2186 = vmatpush3.msra.mxu1 %v434_v61 }
  0xf2   :  { %2187 = vmatprep.subr.mxu1 %v433_v62 }
  0xf3   :  { %2188 = vmatpush3.msra.mxu1 %v433_v62 }
  0xf4   :  { %2189 = vmatprep.subr.mxu1 %v432_v63 }
  0xf5   :  { %2190 = vmatpush3.msra.mxu1 %v432_v63 }
  0xf6   :  { %2191 = vmatprep.subr.mxu1 %v431_v0 }
  0xf7   :  { %2192 = vmatpush3.msra.mxu1 %v431_v0 }
  0xf8   :  { %2193 = vmatprep.subr.mxu1 %v430_v1 }
  0xf9   :  { %2194 = vmatpush3.msra.mxu1 %v430_v1  ;;  %v632_v1 = vld [vmem:[%s3180_s13] sm:$0xff] }
  0xfa   :  { %2195 = vmatprep.subr.mxu1 %v429_v3 }
  0xfb   :  { %2196 = vmatpush3.msra.mxu1 %v429_v3  ;;  %v545_v3 = vand.u32 15, %v531_v54 }
  0xfc   :  { %2197 = vmatprep.subr.mxu1 %v428_v4 }
  0xfd   :  { %2198 = vmatpush3.msra.mxu1 %v428_v4  ;;  %vm595_vm4 = vcmp.ne.s32.totalorder %v545_v3, 15  ;;  %v1837_v3 = vld [vmem:[%s3184_s15] ss:$0 sm:$0xff] }
 0x196   :  { %v2163_v2 = vpop.f32.mrf.mxu0 }
 0x198   :  { %v381_v5 = vpop.f32.mrf.mxu0 }
 0x19a   :  { %v2166_v7 = vpop.f32.mrf.mxu0 }
 0x19c   :  { %v391_v13 = vpop.f32.mrf.mxu0 }
 0x19e   :  { %v2125_v6 = vpop.f32.mrf.mxu1 }
 0x19f   :  { %v387_v15 = vadd.f32 %v2163_v2, %v2125_v6  ;;  %v2811_v2 = vsel %vm2791_vm2, 1.0, %v2430_v59 }
 0x1a0   :  { %v296_v8 = vpop.f32.mrf.mxu1 }
 0x1a1   :  { %v382_v9 = vadd.f32 %v381_v5, %v296_v8  ;;  %v413_v30 = vmul.f32 %v2732_v21, %v387_v15  ;;  %v533_v5 = vadd.s32 24, %v2776_v46  ;;  %v1314_v46 = vld [vmem:[%s3185_s12 + $0x8] sm:$0xff] }
 0x1a2   :  { %v2128_v10 = vpop.f32.mrf.mxu1 }
 0x1a3   :  { %400 = vrot.lane.b32.xlu0 %v382_v9, %s2429_s18  ;;  %v397_v17 = vadd.f32 %v2166_v7, %v2128_v10  ;;  %v412_v22 = vmul.f32 %v2722_v18, %v382_v9  ;;  %v1832_v7 = vld [vmem:[%s3180_s13 + $0x58] sm:$0xff] }
 0x1a4   :  { %v306_v14 = vpop.f32.mrf.mxu1 }
 0x1a5   :  { %v392_v16 = vadd.f32 %v391_v13, %v306_v14  ;;  %v415_v39 = vmul.f32 %v2758_v34, %v397_v17  ;;  %v559_v13 = vand.u32 15, %v533_v5 }
 0x1a7   :  { %402 = vrot.lane.b32.xlu0 %v387_v15, %s2429_s18  ;;  %404 = vrot.lane.b32.xlu1 %v392_v16, %s2429_s18  ;;  %v414_v31 = vmul.f32 %v2739_v24, %v392_v16  ;;  %v1830_v15 = vld [vmem:[%s3180_s13 + $0x48] sm:$0xff]  ;;  %vm597_vm6 = vcmp.ne.s32.totalorder %v559_v13, 15 }
 0x1ab   :  { %406 = vrot.lane.b32.xlu1 %v397_v17, %s2429_s18  ;;  %v2837_v17 = vsel %vm595_vm4, 1.0, %v2430_v59 }
 0x215   :  { %v401_v20 = vpop.permute.xlu0 %400 }
 0x216   :  { %v420_v23 = vmul.f32 %v2727_v19, %v401_v20 }
 0x218   :  { %v424_v27 = vadd.f32 %v420_v23, %v412_v22  ;;  %v1829_v23 = vld [vmem:[%s3180_s13 + $0x40] sm:$0xff] }
 0x219   :  { %v403_v28 = vpop.permute.xlu0 %402  ;;  %v405_v29 = vpop.permute.xlu1 %404 }
 0x21a   :  { %v421_v32 = vmul.f32 %v2744_v25, %v403_v28  ;;  %v422_v33 = vmul.f32 %v2749_v26, %v405_v29  ;;  %2199 = vmatprep.mubr.f32.mxu1 %v424_v27 }
 0x21c   :  { %v425_v36 = vadd.f32 %v421_v32, %v413_v30  ;;  %v426_v37 = vadd.f32 %v422_v33, %v414_v31  ;;  %v2853_v30 = vsel %vm597_vm6, 1.0, %v2430_v59  ;;  %v1845_v33 = vld [vmem:[%s3183_s14 + $0x78] sm:$0xff] }
 0x21d   :  { %v407_v38 = vpop.permute.xlu1 %406 }
 0x21e   :  { %v423_v40 = vmul.f32 %v2763_v35, %v407_v38  ;;  %2200 = vmatmul.mubr.f32.vlgmr.msra.gmra.mxu1 %v425_v36  ;;  %v1844_v36 = vld [vmem:[%s3183_s14 + $0x70] sm:$0xff]  ;;  %v1842_v38 = vld [vmem:[%s3183_s14 + $0x60] sm:$0xff] }
 0x21f   :  { %2202 = vmatprep.mubr.f32.mxu1 %v426_v37  ;;  %v1843_v37 = vld [vmem:[%s3183_s14 + $0x68] sm:$0xff] }
 0x220   :  { %v427_v41 = vadd.f32 %v423_v40, %v415_v39  ;;  %v1841_v39 = vld [vmem:[%s3183_s14 + $0x58] sm:$0xff] }
 0x221   :  { %v987_v40 = vld [vmem:[%s3183_s14 + $0x38] sm:$0xff] }
 0x222   :  { %2203 = vmatmul.mubr.f32.gmra.mxu1 %v427_v41  ;;  %2269 = vmatprep.subr.mxu1 %v987_v40  ;;  %v1840_v41 = vld [vmem:[%s3183_s14 + $0x50] sm:$0xff] }
 0x223   :  { %2270 = vmatpush3.msra.mxu1 %v987_v40 }
 0x224   :  { %2271 = vmatprep.subr.mxu1 %v986_v42 }
 0x225   :  { %2272 = vmatpush3.msra.mxu1 %v986_v42  ;;  %v1857_v42 = vld [vmem:[%s3183_s14 + $0x98] sm:$0xff] }
 0x2de   :  { %v2201_v49 = vpop.f32.mrf.mxu1 }
 0x2df   :  { %v607_v62 = vrot.slane %v2201_v49, 7  ;;  %v620_v14 = vrot.slane %v2201_v49, 1 }
 0x2e0   :  { %v2780_v51 = vpop.f32.mrf.mxu1 }
 0x2e1   :  { %2213 = vmatprep.mubr.msk.f32.mxu0 %vm68_vm0, %v2780_v51  ;;  %v606_v56 = vrot.slane %v2780_v51, 7  ;;  %v619_v12 = vrot.slane %v2780_v51, 1  ;;  %v981_v51 = vld [vmem:[%s3183_s14 + $0x8] sm:$0xff] }
 0x2e2   :  { %v2787_v53 = vpop.f32.mrf.mxu1  ;;  %2214 = vmatmul.mubr.msk.f32.vlgmr.msra.gmra.mxu0 %vm68_vm0, %v2201_v49  ;;  %v1861_v49 = vld [vmem:[%s3183_s14 + $0xb8] sm:$0xff] }
 0x2e3   :  { %v609_v57 = vrot.slane %v2787_v53, 7  ;;  %2220 = vmatpush3.msra.mxu0 %v635_v44  ;;  %v613_v9 = vsel %vm610_vm3, %v606_v56, %v607_v62  ;;  %v622_v16 = vrot.slane %v2787_v53, 1  ;;  %v626_v27 = vsel %vm623_vm5, %v619_v12, %v620_v14  ;;  %v985_v44 = vld [vmem:[%s3183_s14 + $0x28] sm:$0xff] }
 0x2e4   :  { %v520_v61 = vpop.f32.mrf.mxu1  ;;  %2221 = vmatprep.subr.mxu0 %v634_v52  ;;  %2273 = vmatprep.subr.mxu1 %v985_v44 }
 0x2e5   :  { %v614_v63 = vsel %vm610_vm3, %v609_v57, %v606_v56  ;;  %v608_v0 = vrot.slane %v520_v61, 7  ;;  %2216 = vmatprep.mubr.msk.f32.mxu0 %vm68_vm0, %v520_v61  ;;  %2222 = vmatpush3.msra.mxu0 %v634_v52  ;;  %v621_v10 = vrot.slane %v520_v61, 1  ;;  %v627_v29 = vsel %vm623_vm5, %v622_v16, %v619_v12  ;;  %v980_v52 = vld [vmem:[%s3183_s14] sm:$0xff] }
 0x2e6   :  { %2217 = vmatmul.mubr.msk.f32.gmra.mxu0 %vm68_vm0, %v2787_v53  ;;  %2223 = vmatprep.subr.mxu0 %v633_v58  ;;  %v615_v4 = vmul.f32 %v2800_v60, %v614_v63  ;;  %v631_v32 = vmul.f32 %v2853_v30, %v627_v29 }
 0x2e7   :  { %v612_v6 = vsel %vm610_vm3, %v607_v62, %v608_v0  ;;  %2224 = vmatpush3.msra.mxu0 %v633_v58  ;;  %v625_v20 = vsel %vm623_vm5, %v620_v14, %v621_v10  ;;  %v611_v22 = vsel %vm610_vm3, %v608_v0, %v609_v57  ;;  %v624_v31 = vsel %vm623_vm5, %v621_v10, %v622_v16 }
 0x2e8   :  { %2225 = vmatprep.subr.mxu0 %v632_v1  ;;  %2227 = vmatprep.mubr.msk.f32.mxu0 %vm68_vm0, %v615_v4  ;;  %v617_v8 = vmul.f32 %v2811_v2, %v612_v6  ;;  %v629_v28 = vmul.f32 %v2837_v17, %v625_v20 }
 0x2e9   :  { %2226 = vmatpush3.msra.mxu0 %v632_v1  ;;  %2274 = vmatpush3.msra.mxu1 %v985_v44 }
 0x2ea   :  { %2228 = vmatmul.mubr.msk.f32.vlgmr.msra.gmra.mxu0 %vm68_vm0, %v613_v9  ;;  %2233 = vmatprep.subr.mxu0 %v1832_v7 }
 0x2eb   :  { %2230 = vmatprep.mubr.msk.f32.mxu0 %vm68_vm0, %v617_v8  ;;  %2234 = vmatpush3.msra.mxu0 %v1832_v7 }
 0x2ec   :  { %2235 = vmatprep.subr.mxu0 %v1831_v11  ;;  %2275 = vmatprep.subr.mxu1 %v984_v47 }
 0x2ed   :  { %2236 = vmatpush3.msra.mxu0 %v1831_v11  ;;  %2276 = vmatpush3.msra.mxu1 %v984_v47  ;;  %v1856_v47 = vld [vmem:[%s3183_s14 + $0x90] sm:$0xff] }
 0x2ee   :  { %2231 = vmatmul.mubr.msk.f32.gmra.mxu0 %vm68_vm0, %v611_v22  ;;  %2237 = vmatprep.subr.mxu0 %v1830_v15  ;;  %v1860_v22 = vld [vmem:[%s3183_s14 + $0xb0] sm:$0xff] }
 0x2ef   :  { %2238 = vmatpush3.msra.mxu0 %v1830_v15  ;;  %2241 = vmatprep.mubr.msk.f32.mxu0 %vm68_vm0, %v626_v27 }
 0x2f0   :  { %2239 = vmatprep.subr.mxu0 %v1829_v23  ;;  %2277 = vmatprep.subr.mxu1 %v983_v48 }
 0x2f1   :  { %2240 = vmatpush3.msra.mxu0 %v1829_v23  ;;  %2278 = vmatpush3.msra.mxu1 %v983_v48  ;;  %v1855_v48 = vld [vmem:[%s3183_s14 + $0x88] sm:$0xff] }
 0x2f2   :  { %2242 = vmatmul.mubr.msk.f32.vlgmr.msra.gmra.mxu0 %vm68_vm0, %v629_v28  ;;  %2247 = vmatprep.subr.mxu0 %v1845_v33 }
 0x2f3   :  { %2244 = vmatprep.mubr.msk.f32.mxu0 %vm68_vm0, %v624_v31  ;;  %2248 = vmatpush3.msra.mxu0 %v1845_v33  ;;  %v1859_v31 = vld [vmem:[%s3183_s14 + $0xa8] sm:$0xff] }
 0x2f4   :  { %2249 = vmatprep.subr.mxu0 %v1844_v36  ;;  %2279 = vmatprep.subr.mxu1 %v982_v50 }
 0x2f5   :  { %2250 = vmatpush3.msra.mxu0 %v1844_v36  ;;  %2280 = vmatpush3.msra.mxu1 %v982_v50 }
 0x2f6   :  { %2245 = vmatmul.mubr.msk.f32.gmra.mxu0 %vm68_vm0, %v631_v32  ;;  %2251 = vmatprep.subr.mxu0 %v1843_v37 }
 0x2f7   :  { %2252 = vmatpush3.msra.mxu0 %v1843_v37  ;;  %2281 = vmatprep.subr.mxu1 %v981_v51 }
 0x2f8   :  { %2253 = vmatprep.subr.mxu0 %v1842_v38  ;;  %2282 = vmatpush3.msra.mxu1 %v981_v51  ;;  %v1854_v51 = vld [vmem:[%s3183_s14 + $0x80] sm:$0xff] }
 0x2f9   :  { %2254 = vmatpush3.msra.mxu0 %v1842_v38  ;;  %2283 = vmatprep.subr.mxu1 %v980_v52 }
 0x2fa   :  { %2255 = vmatprep.subr.mxu0 %v1841_v39  ;;  %2284 = vmatpush3.msra.mxu1 %v980_v52 }
 0x2fb   :  { %2256 = vmatpush3.msra.mxu0 %v1841_v39  ;;  %v1858_v39 = vld [vmem:[%s3183_s14 + $0xa0] sm:$0xff] }
 0x2fc   :  { %2257 = vmatprep.subr.mxu0 %v1840_v41 }
 0x2fd   :  { %2258 = vmatpush3.msra.mxu0 %v1840_v41 }
 0x2fe   :  { %2259 = vmatprep.subr.mxu0 %v1839_v43 }
 0x2ff   :  { %2260 = vmatpush3.msra.mxu0 %v1839_v43 }
 0x300   :  { %2261 = vmatprep.subr.mxu0 %v1838_v45 }
 0x301   :  { %2262 = vmatpush3.msra.mxu0 %v1838_v45 }
 0x302   :  { %2291 = vmatprep.subr.mxu0 %v1861_v49 }
 0x3a2   :  { %v2215_v53 = vpop.f32.mrf.mxu0 }
 0x3a4   :  { %v719_v54 = vpop.f32.mrf.mxu0 }
 0x3a6   :  { %v2218_v55 = vpop.f32.mrf.mxu0 }
 0x3a8   :  { %v729_v56 = vpop.f32.mrf.mxu0 }
 0x3aa   :  { %v2229_v57 = vpop.f32.mrf.mxu0 }
 0x3ab   :  { %v822_v62 = vadd.f32 %v2229_v57, %v2215_v53 }
 0x3ac   :  { %v816_v58 = vpop.f32.mrf.mxu0 }
 0x3ad   :  { %v817_v0 = vadd.f32 %v816_v58, %v719_v54 }
 0x3ae   :  { %v2232_v59 = vpop.f32.mrf.mxu0 }
 0x3af   :  { %v832_v5 = vadd.f32 %v2232_v59, %v2218_v55 }
 0x3b0   :  { %v826_v61 = vpop.f32.mrf.mxu0 }
 0x3b1   :  { %v827_v11 = vadd.f32 %v826_v61, %v729_v56  ;;  %v1315_v56 = vld [vmem:[%s3185_s12 + $0x10] sm:$0xff] }
 0x3b2   :  { %v2243_v63 = vpop.f32.mrf.mxu0 }
 0x3b3   :  { %v938_v1 = vadd.f32 %v2243_v63, %v822_v62 }
 0x3b4   :  { %v918_v4 = vpop.f32.mrf.mxu0 }
 0x3b5   :  { %v937_v6 = vadd.f32 %v918_v4, %v817_v0  ;;  %v949_v7 = vadd.f32 %v1837_v3, %v938_v1 }
 0x3b6   :  { %v2246_v8 = vpop.f32.mrf.mxu0 }
 0x3b7   :  { %v948_v9 = vadd.f32 %v1837_v3, %v937_v6  ;;  %v940_v10 = vadd.f32 %v2246_v8, %v832_v5  ;;  %v953_v15 = vmax.f32 %v949_v7, 0.0  ;;  %v1866_v8 = vld [vmem:[%s3186_s16] ss:$0 sm:$0xff] }
 0x3b8   :  { %v928_v12 = vpop.f32.mrf.mxu0 }
 0x3b9   :  { %v952_v13 = vmax.f32 %v948_v9, 0.0  ;;  %v951_v14 = vadd.f32 %v1837_v3, %v940_v10  ;;  %v939_v16 = vadd.f32 %v928_v12, %v827_v11  ;;  %v969_v33 = vrot.slane %v953_v15, 1 }
 0x3ba   :  { %v957_v37 = vrot.slane %v953_v15, 7 }
 0x3bb   :  { %v955_v20 = vmax.f32 %v951_v14, 0.0  ;;  %2263 = vmatprep.mubr.msk.f32.mxu0 %vm997_vm7, %v952_v13  ;;  %v950_v23 = vadd.f32 %v1837_v3, %v939_v16  ;;  %v956_v27 = vrot.slane %v952_v13, 7  ;;  %v968_v28 = vrot.slane %v952_v13, 1 }
 0x3bc   :  { %2264 = vmatmul.mubr.msk.f32.vlgmr.msra.gmra.mxu0 %vm997_vm7, %v953_v15 }
 0x3bd   :  { %v959_v29 = vrot.slane %v955_v20, 7  ;;  %2292 = vmatpush3.msra.mxu0 %v1861_v49  ;;  %v954_v32 = vmax.f32 %v950_v23, 0.0  ;;  %v974_v41 = vsel %vm623_vm5, %v968_v28, %v969_v33  ;;  %v971_v49 = vrot.slane %v955_v20, 1 }
 0x3be   :  { %2293 = vmatprep.subr.mxu0 %v1860_v22 }
 0x3bf   :  { %2294 = vmatpush3.msra.mxu0 %v1860_v22  ;;  %v963_v36 = vsel %vm610_vm3, %v959_v29, %v956_v27  ;;  %v958_v38 = vrot.slane %v954_v32, 7  ;;  %2266 = vmatprep.mubr.msk.f32.mxu0 %vm997_vm7, %v954_v32  ;;  %v970_v45 = vrot.slane %v954_v32, 1  ;;  %v975_v53 = vsel %vm623_vm5, %v971_v49, %v968_v28 }
 0x3c0   :  { %2295 = vmatprep.subr.mxu0 %v1859_v31  ;;  %v964_v40 = vmul.f32 %v2800_v60, %v963_v36  ;;  %2267 = vmatmul.mubr.msk.f32.gmra.mxu0 %vm997_vm7, %v955_v20  ;;  %v962_v60 = vsel %vm610_vm3, %v956_v27, %v957_v37  ;;  %v979_v55 = vmul.f32 %v2853_v30, %v975_v53  ;;  %v1313_v30 = vld [vmem:[%s3185_s12] sm:$0xff]  ;;  %v1601_v36 = vld [vmem:[%s3188_s10 + $0x70] sm:$0xff] }
 0x3c1   :  { %2296 = vmatpush3.msra.mxu0 %v1859_v31  ;;  %2307 = vmatprep.mubr.msk.f32.mxu0 %vm997_vm7, %v974_v41  ;;  %v961_v43 = vsel %vm610_vm3, %v957_v37, %v958_v38  ;;  %v973_v50 = vsel %vm623_vm5, %v969_v33, %v970_v45  ;;  %v972_v54 = vsel %vm623_vm5, %v970_v45, %v971_v49  ;;  %v1602_v33 = vld [vmem:[%s3188_s10 + $0x78] sm:$0xff]  ;;  %v1600_v37 = vld [vmem:[%s3188_s10 + $0x68] sm:$0xff] }
 0x3c2   :  { %2297 = vmatprep.subr.mxu0 %v1858_v39  ;;  %2285 = vmatprep.mubr.msk.f32.mxu1 %vm997_vm7, %v964_v40  ;;  %v966_v44 = vmul.f32 %v2811_v2, %v961_v43  ;;  %v960_v2 = vsel %vm610_vm3, %v958_v38, %v959_v29  ;;  %v977_v52 = vmul.f32 %v2837_v17, %v973_v50  ;;  %v1316_v17 = vld [vmem:[%s3185_s12 + $0x18] sm:$0xff]  ;;  %v1434_v29 = vld [vmem:[%s3187_s8] sm:$0xff]  ;;  %v1597_v40 = vld [vmem:[%s3188_s10 + $0x50] sm:$0xff] }
 0x3c3   :  { %2298 = vmatpush3.msra.mxu0 %v1858_v39  ;;  %2286 = vmatmul.mubr.msk.f32.vlgmr.msra.gmra.mxu1 %vm997_vm7, %v962_v60  ;;  %v1599_v38 = vld [vmem:[%s3188_s10 + $0x60] sm:$0xff]  ;;  %v1598_v39 = vld [vmem:[%s3188_s10 + $0x58] sm:$0xff]  ;;  %v1596_v41 = vld [vmem:[%s3188_s10 + $0x48] sm:$0xff] }
 0x3c4   :  { %2299 = vmatprep.subr.mxu0 %v1857_v42  ;;  %2288 = vmatprep.mubr.msk.f32.mxu1 %vm997_vm7, %v966_v44  ;;  %v1594_v43 = vld [vmem:[%s3188_s10 + $0x38] sm:$0xff]  ;;  %v1593_v60 = vld [vmem:[%s3188_s10 + $0x30] sm:$0xff] }
 0x3c5   :  { %2300 = vmatpush3.msra.mxu0 %v1857_v42  ;;  %2313 = vmatprep.subr.mxu1 %v1316_v17  ;;  %v1595_v42 = vld [vmem:[%s3188_s10 + $0x40] sm:$0xff] }
 0x3c6   :  { %2301 = vmatprep.subr.mxu0 %v1856_v47  ;;  %2314 = vmatpush3.msra.mxu1 %v1316_v17 }
 0x3c7   :  { %2302 = vmatpush3.msra.mxu0 %v1856_v47  ;;  %2289 = vmatmul.mubr.msk.f32.gmra.mxu1 %vm997_vm7, %v960_v2 }
 0x3c8   :  { %2303 = vmatprep.subr.mxu0 %v1855_v48  ;;  %2315 = vmatprep.subr.mxu1 %v1315_v56 }
 0x3c9   :  { %2304 = vmatpush3.msra.mxu0 %v1855_v48  ;;  %2316 = vmatpush3.msra.mxu1 %v1315_v56  ;;  %v1584_v56 = vld [vmem:[%s3189_s9 + $0x68] sm:$0xff] }
 0x3ca   :  { %2305 = vmatprep.subr.mxu0 %v1854_v51  ;;  %2317 = vmatprep.subr.mxu1 %v1314_v46 }
 0x3cb   :  { %2306 = vmatpush3.msra.mxu0 %v1854_v51  ;;  %2318 = vmatpush3.msra.mxu1 %v1314_v46  ;;  %v1438_v46 = vld [vmem:[%s3187_s8 + $0x20] sm:$0xff] }
 0x3cc   :  { %2308 = vmatmul.mubr.msk.f32.vlgmr.msra.gmra.mxu0 %vm997_vm7, %v977_v52  ;;  %2319 = vmatprep.subr.mxu1 %v1313_v30 }
 0x3cd   :  { %2310 = vmatprep.mubr.msk.f32.mxu0 %vm997_vm7, %v972_v54  ;;  %2320 = vmatpush3.msra.mxu1 %v1313_v30  ;;  %v1583_v30 = vld [vmem:[%s3189_s9 + $0x60] sm:$0xff] }
 0x3ce   :  { %2347 = vmatprep.subr.mxu0 %v1602_v33 }
 0x3cf   :  { %2348 = vmatpush3.msra.mxu0 %v1602_v33  ;;  %v1777_v33 = vld [vmem:[%s3190_s1] sm:$0xff] }
 0x3d0   :  { %2311 = vmatmul.mubr.msk.f32.gmra.mxu0 %vm997_vm7, %v979_v55  ;;  %2349 = vmatprep.subr.mxu0 %v1601_v36 }
 0x3d1   :  { %2350 = vmatpush3.msra.mxu0 %v1601_v36  ;;  %v2425_v36 = vld [vmem:[%s3197_s26 + $0x8] sm:$0xff] }
 0x3d2   :  { %2351 = vmatprep.subr.mxu0 %v1600_v37 }
 0x3d3   :  { %2352 = vmatpush3.msra.mxu0 %v1600_v37 }
 0x3d4   :  { %2353 = vmatprep.subr.mxu0 %v1599_v38 }
 0x3d5   :  { %2354 = vmatpush3.msra.mxu0 %v1599_v38  ;;  %v1774_v38 = vld [vmem:[%s3191_s2 + $0x8] sm:$0xff] }
 0x3d6   :  { %2355 = vmatprep.subr.mxu0 %v1598_v39 }
 0x3d7   :  { %2356 = vmatpush3.msra.mxu0 %v1598_v39  ;;  %v1780_v39 = vld [vmem:[%s3190_s1 + $0x18] sm:$0xff] }
 0x3d8   :  { %2357 = vmatprep.subr.mxu0 %v1597_v40 }
 0x3d9   :  { %2358 = vmatpush3.msra.mxu0 %v1597_v40  ;;  %v2426_v40 = vld [vmem:[%s3197_s26] sm:$0xff] }
 0x3da   :  { %2359 = vmatprep.subr.mxu0 %v1596_v41 }
 0x3db   :  { %2360 = vmatpush3.msra.mxu0 %v1596_v41  ;;  %v1781_v41 = vsub.f32 %v2426_v40, %v1777_v33 }
 0x3dc   :  { %2361 = vmatprep.subr.mxu0 %v1595_v42 }
 0x3dd   :  { %2362 = vmatpush3.msra.mxu0 %v1595_v42 }
 0x3de   :  { %2363 = vmatprep.subr.mxu0 %v1594_v43 }
 0x3df   :  { %2364 = vmatpush3.msra.mxu0 %v1594_v43  ;;  %v1773_v43 = vld [vmem:[%s3191_s2] sm:$0xff] }
 0x3e0   :  { %2365 = vmatprep.subr.mxu0 %v1593_v60 }
 0x3e1   :  { %2366 = vmatpush3.msra.mxu0 %v1593_v60  ;;  %v1779_v60 = vld [vmem:[%s3190_s1 + $0x10] sm:$0xff] }
 0x47c   :  { %v2265_v57 = vpop.f32.mrf.mxu0 }
 0x47e   :  { %v1076_v58 = vpop.f32.mrf.mxu0 }
 0x480   :  { %v2268_v61 = vpop.f32.mrf.mxu0 }
 0x482   :  { %v1086_v63 = vpop.f32.mrf.mxu0 }
 0x483   :  { %v2287_v59 = vpop.f32.mrf.mxu1 }
 0x484   :  { %v1179_v1 = vadd.f32 %v2287_v59, %v2265_v57  ;;  %v1439_v57 = vld [vmem:[%s3187_s8 + $0x28] sm:$0xff]  ;;  %v1440_v59 = vld [vmem:[%s3187_s8 + $0x30] sm:$0xff] }
 0x485   :  { %v1173_v62 = vpop.f32.mrf.mxu1 }
 0x486   :  { %v1174_v4 = vadd.f32 %v1173_v62, %v1076_v58  ;;  %v1582_v58 = vld [vmem:[%s3189_s9 + $0x58] sm:$0xff] }
 0x487   :  { %v2290_v0 = vpop.f32.mrf.mxu1  ;;  %v1441_v62 = vld [vmem:[%s3187_s8 + $0x38] sm:$0xff] }
 0x488   :  { %v1189_v10 = vadd.f32 %v2290_v0, %v2268_v61  ;;  %v1581_v61 = vld [vmem:[%s3189_s9 + $0x50] sm:$0xff]  ;;  %v1579_v0 = vld [vmem:[%s3189_s9 + $0x40] sm:$0xff] }
 0x489   :  { %v1183_v5 = vpop.f32.mrf.mxu1 }
 0x48a   :  { %v1184_v12 = vadd.f32 %v1183_v5, %v1086_v63  ;;  %v1580_v63 = vld [vmem:[%s3189_s9 + $0x48] sm:$0xff]  ;;  %v1575_v5 = vld [vmem:[%s3189_s9 + $0x20] sm:$0xff] }
 0x48c   :  { %v2309_v3 = vpop.f32.mrf.mxu0 }
 0x48d   :  { %v1299_v6 = vadd.f32 %v2309_v3, %v1179_v1  ;;  %v1578_v1 = vld [vmem:[%s3189_s9 + $0x38] sm:$0xff]  ;;  %v1577_v3 = vld [vmem:[%s3189_s9 + $0x30] sm:$0xff] }
 0x48e   :  { %v1279_v7 = vpop.f32.mrf.mxu0 }
 0x48f   :  { %v1298_v9 = vadd.f32 %v1279_v7, %v1174_v4  ;;  %v1310_v14 = vadd.f32 %v1866_v8, %v1299_v6  ;;  %v1576_v4 = vld [vmem:[%s3189_s9 + $0x28] sm:$0xff]  ;;  %v1574_v6 = vld [vmem:[%s3189_s9 + $0x18] sm:$0xff]  ;;  %v1573_v7 = vld [vmem:[%s3189_s9 + $0x10] sm:$0xff] }
 0x490   :  { %v2312_v11 = vpop.f32.mrf.mxu0 }
 0x491   :  { %v1309_v13 = vadd.f32 %v1866_v8, %v1298_v9  ;;  %v1301_v15 = vadd.f32 %v2312_v11, %v1189_v10  ;;  %v1572_v9 = vld [vmem:[%s3189_s9 + $0x8] sm:$0xff]  ;;  %v1591_v10 = vld [vmem:[%s3188_s10 + $0x20] sm:$0xff] }
 0x492   :  { %v1289_v16 = vpop.f32.mrf.mxu0  ;;  %v1571_v11 = vld [vmem:[%s3189_s9] sm:$0xff] }
 0x493   :  { %v1300_v20 = vadd.f32 %v1289_v16, %v1184_v12  ;;  %2321 = vmatprep.mubr.msk.f32.mxu1 %vm68_vm0, %v1309_v13  ;;  %v1312_v23 = vadd.f32 %v1866_v8, %v1301_v15  ;;  %v1590_v12 = vld [vmem:[%s3188_s10 + $0x18] sm:$0xff]  ;;  %v1589_v13 = vld [vmem:[%s3188_s10 + $0x10] sm:$0xff]  ;;  %v1587_v15 = vld [vmem:[%s3188_s10] sm:$0xff] }
 0x494   :  { %2322 = vmatmul.mubr.msk.f32.vlgmr.msra.gmra.mxu1 %vm68_vm0, %v1310_v14  ;;  %v1588_v14 = vld [vmem:[%s3188_s10 + $0x8] sm:$0xff] }
 0x495   :  { %v1311_v22 = vadd.f32 %v1866_v8, %v1300_v20  ;;  %v1592_v8 = vld [vmem:[%s3188_s10 + $0x28] sm:$0xff] }
 0x496   :  { %2367 = vmatprep.subr.mxu0 %v1592_v8 }
 0x497   :  { %2324 = vmatprep.mubr.msk.f32.mxu1 %vm68_vm0, %v1311_v22  ;;  %2368 = vmatpush3.msra.mxu0 %v1592_v8 }
 0x498   :  { %2325 = vmatmul.mubr.msk.f32.gmra.mxu1 %vm68_vm0, %v1312_v23  ;;  %2369 = vmatprep.subr.mxu0 %v1591_v10 }
 0x499   :  { %2335 = vmatprep.mubr.msk.f32.mxu1 %vm68_vm0, %v1434_v29  ;;  %2370 = vmatpush3.msra.mxu0 %v1591_v10 }
 0x49a   :  { %2371 = vmatprep.subr.mxu0 %v1590_v12 }
 0x49b   :  { %2372 = vmatpush3.msra.mxu0 %v1590_v12 }
 0x49c   :  { %2373 = vmatprep.subr.mxu0 %v1589_v13 }
 0x49d   :  { %2374 = vmatpush3.msra.mxu0 %v1589_v13 }
 0x49e   :  { %2375 = vmatprep.subr.mxu0 %v1588_v14 }
 0x49f   :  { %2376 = vmatpush3.msra.mxu0 %v1588_v14 }
 0x4a0   :  { %2377 = vmatprep.subr.mxu0 %v1587_v15 }
 0x4a1   :  { %2378 = vmatpush3.msra.mxu0 %v1587_v15 }
 0x554   :  { %v2323_v27 = vpop.f32.mrf.mxu1 }
 0x555   :  { %v1423_v52 = vmul.f32 %v2323_v27, %v2732_v21  ;;  %v1435_v21 = vld [vmem:[%s3187_s8 + $0x8] sm:$0xff] }
 0x556   :  { %v1395_v28 = vpop.f32.mrf.mxu1 }
 0x557   :  { %v1422_v17 = vmul.f32 %v1395_v28, %v2722_v18  ;;  %v1436_v18 = vld [vmem:[%s3187_s8 + $0x10] sm:$0xff] }
 0x558   :  { %v2326_v31 = vpop.f32.mrf.mxu1 }
 0x559   :  { %1420 = vrot.lane.b32.xlu0 %v2326_v31, %s2429_s18  ;;  %v1425_v45 = vmul.f32 %v2326_v31, %v2758_v34 }
 0x55a   :  { %v1405_v32 = vpop.f32.mrf.mxu1 }
 0x55b   :  { %1418 = vrot.lane.b32.xlu1 %v1405_v32, %s2429_s18  ;;  %v1424_v2 = vmul.f32 %v1405_v32, %v2739_v24  ;;  %v1778_v32 = vld [vmem:[%s3190_s1 + $0x8] sm:$0xff] }
 0x55c   :  { %v1782_v37 = vsub.f32 %v2425_v36, %v1778_v32 }
 0x55d   :  { %1416 = vrot.lane.b32.xlu0 %v2323_v27, %s2429_s18 }
 0x55f   :  { %1414 = vrot.lane.b32.xlu1 %v1395_v28, %s2429_s18 }
 0x5cb   :  { %v1421_v44 = vpop.permute.xlu0 %1420 }
 0x5cc   :  { %v1429_v47 = vmul.f32 %v1421_v44, %v2763_v35  ;;  %v1786_v44 = vmul.f32 %v1782_v37, %v1774_v38 }
 0x5cd   :  { %v1419_v48 = vpop.permute.xlu1 %1418 }
 0x5ce   :  { %v1433_v49 = vsub.f32 %v1425_v45, %v1429_v47  ;;  %v1428_v50 = vmul.f32 %v1419_v48, %v2749_v26  ;;  %v1437_v26 = vld [vmem:[%s3187_s8 + $0x18] sm:$0xff] }
 0x5cf   :  { %v1417_v51 = vpop.permute.xlu0 %1416  ;;  %v2427_v45 = vld [vmem:[%s3197_s26 + $0x18] sm:$0xff] }
 0x5d0   :  { %v1432_v53 = vsub.f32 %v1424_v2, %v1428_v50  ;;  %v1427_v54 = vmul.f32 %v1417_v51, %v2744_v25  ;;  %2327 = vmatprep.subr.mxu1 %v1433_v49  ;;  %v1586_v25 = vld [vmem:[%s3189_s9 + $0x78] sm:$0xff]  ;;  %v1784_v47 = vsub.f32 %v2427_v45, %v1780_v39  ;;  %v1785_v2 = vmul.f32 %v1781_v41, %v1773_v43 }
 0x5d1   :  { %2328 = vmatpush3.msra.mxu1 %v1433_v49  ;;  %v1415_v55 = vpop.permute.xlu1 %1414  ;;  %v1776_v48 = vld [vmem:[%s3191_s2 + $0x18] sm:$0xff]  ;;  %v2428_v49 = vld [vmem:[%s3197_s26 + $0x10] sm:$0xff] }
 0x5d2   :  { %v1431_v34 = vsub.f32 %v1423_v52, %v1427_v54  ;;  %v1426_v35 = vmul.f32 %v1415_v55, %v2727_v19  ;;  %2329 = vmatprep.subr.mxu1 %v1432_v53  ;;  %v1585_v19 = vld [vmem:[%s3189_s9 + $0x70] sm:$0xff]  ;;  %v1783_v50 = vsub.f32 %v2428_v49, %v1779_v60  ;;  %v1788_v54 = vmul.f32 %v1784_v47, %v1776_v48 }
 0x5d3   :  { %2330 = vmatpush3.msra.mxu1 %v1432_v53  ;;  %v1775_v52 = vld [vmem:[%s3191_s2 + $0x10] sm:$0xff]  ;;  %v1790_v53 = vsub.f32 %v2425_v36, %v1786_v44 }
 0x5d4   :  { %v1430_v24 = vsub.f32 %v1422_v17, %v1426_v35  ;;  %2331 = vmatprep.subr.mxu1 %v1431_v34  ;;  %v1787_v35 = vmul.f32 %v1783_v50, %v1775_v52 }
 0x5d5   :  { %2332 = vmatpush3.msra.mxu1 %v1431_v34  ;;  %v1789_v34 = vsub.f32 %v2426_v40, %v1785_v2 }
 0x5d6   :  { %2333 = vmatprep.subr.mxu1 %v1430_v24 }
 0x5d7   :  { %2334 = vmatpush3.msra.mxu1 %v1430_v24 }
 0x5d8   :  { %2336 = vmatmul.mubr.msk.f32.vlgmr.msra.gmra.mxu1 %vm68_vm0, %v1435_v21  ;;  %2385 = vmatprep.subr.mxu1 %v1586_v25 }
 0x5d9   :  { %2338 = vmatprep.mubr.msk.f32.mxu1 %vm68_vm0, %v1436_v18  ;;  %2386 = vmatpush3.msra.mxu1 %v1586_v25 }
 0x5da   :  { %2387 = vmatprep.subr.mxu1 %v1585_v19 }
 0x5db   :  { %2388 = vmatpush3.msra.mxu1 %v1585_v19  ;;  %v1792_v19 = vsub.f32 %v2427_v45, %v1788_v54 }
 0x5dc   :  { %2339 = vmatmul.mubr.msk.f32.gmra.mxu1 %vm68_vm0, %v1437_v26  ;;  %2389 = vmatprep.subr.mxu1 %v1584_v56 }
 0x5dd   :  { %2341 = vmatprep.mubr.msk.f32.mxu1 %vm68_vm0, %v1438_v46  ;;  %2390 = vmatpush3.msra.mxu1 %v1584_v56 }
 0x5de   :  { %2391 = vmatprep.subr.mxu1 %v1583_v30 }
 0x5df   :  { %2392 = vmatpush3.msra.mxu1 %v1583_v30  ;;  %v1791_v30 = vsub.f32 %v2428_v49, %v1787_v35 }
 0x5e0   :  { %2342 = vmatmul.mubr.msk.f32.gmra.mxu1 %vm68_vm0, %v1439_v57  ;;  %2393 = vmatprep.subr.mxu1 %v1582_v58 }
 0x5e1   :  { %2344 = vmatprep.mubr.msk.f32.mxu1 %vm68_vm0, %v1440_v59  ;;  %2394 = vmatpush3.msra.mxu1 %v1582_v58 }
 0x5e2   :  { %2395 = vmatprep.subr.mxu1 %v1581_v61 }
 0x5e3   :  { %2396 = vmatpush3.msra.mxu1 %v1581_v61 }
 0x5e4   :  { %2345 = vmatmul.mubr.msk.f32.gmra.mxu1 %vm68_vm0, %v1441_v62  ;;  %2397 = vmatprep.subr.mxu1 %v1580_v63 }
 0x5e5   :  { %2398 = vmatpush3.msra.mxu1 %v1580_v63 }
 0x5e6   :  { %2399 = vmatprep.subr.mxu1 %v1579_v0 }
 0x5e7   :  { %2400 = vmatpush3.msra.mxu1 %v1579_v0 }
 0x5e8   :  { %2401 = vmatprep.subr.mxu1 %v1578_v1 }
 0x5e9   :  { %2402 = vmatpush3.msra.mxu1 %v1578_v1 }
 0x5ea   :  { %2403 = vmatprep.subr.mxu1 %v1577_v3 }
 0x5eb   :  { %2404 = vmatpush3.msra.mxu1 %v1577_v3 }
 0x5ec   :  { %2405 = vmatprep.subr.mxu1 %v1576_v4 }
 0x5ed   :  { %2406 = vmatpush3.msra.mxu1 %v1576_v4 }
 0x5ee   :  { %2407 = vmatprep.subr.mxu1 %v1575_v5 }
 0x5ef   :  { %2408 = vmatpush3.msra.mxu1 %v1575_v5 }
 0x5f0   :  { %2409 = vmatprep.subr.mxu1 %v1574_v6 }
 0x5f1   :  { %2410 = vmatpush3.msra.mxu1 %v1574_v6 }
 0x5f2   :  { %2411 = vmatprep.subr.mxu1 %v1573_v7 }
 0x5f3   :  { %2412 = vmatpush3.msra.mxu1 %v1573_v7 }
 0x5f4   :  { %2413 = vmatprep.subr.mxu1 %v1572_v9 }
 0x5f5   :  { %2414 = vmatpush3.msra.mxu1 %v1572_v9 }
 0x5f6   :  { %2415 = vmatprep.subr.mxu1 %v1571_v11 }
 0x5f7   :  { %2416 = vmatpush3.msra.mxu1 %v1571_v11 }
 0x698   :  { %v2337_v16 = vpop.f32.mrf.mxu1 }
 0x69a   :  { %v1532_v20 = vpop.f32.mrf.mxu1 }
 0x69b   :  { %2417 = vmatprep.mubr.f32.mxu1 %v1532_v20 }
 0x69c   :  { %v2340_v22 = vpop.f32.mrf.mxu1  ;;  %2418 = vmatmul.mubr.f32.vlgmr.msra.gmra.mxu1 %v2337_v16 }
 0x69e   :  { %v1542_v23 = vpop.f32.mrf.mxu1 }
 0x69f   :  { %2420 = vmatprep.mubr.f32.mxu1 %v1542_v23 }
 0x6a0   :  { %v2343_v27 = vpop.f32.mrf.mxu1  ;;  %2421 = vmatmul.mubr.f32.gmra.mxu1 %v2340_v22 }
 0x6a2   :  { %v1552_v28 = vpop.f32.mrf.mxu1 }
 0x6a3   :  { %2379 = vmatprep.mubr.f32.mxu0 %v1552_v28 }
 0x6a4   :  { %v2346_v29 = vpop.f32.mrf.mxu1  ;;  %2380 = vmatmul.mubr.f32.vlgmr.msra.gmra.mxu0 %v2343_v27 }
 0x6a6   :  { %v1562_v31 = vpop.f32.mrf.mxu1 }
 0x6a7   :  { %2382 = vmatprep.mubr.f32.mxu0 %v1562_v31 }
 0x6a8   :  { %2383 = vmatmul.mubr.f32.gmra.mxu0 %v2346_v29 }
 0x75c   :  { %v2419_v42 = vpop.f32.mrf.mxu1 }
 0x75e   :  { %v1754_v51 = vpop.f32.mrf.mxu1 }
 0x760   :  { %v2422_v24 = vpop.f32.mrf.mxu1 }
 0x762   :  { %v1764_v57 = vpop.f32.mrf.mxu1 }
 0x764   :  { %v2381_v55 = vpop.f32.mrf.mxu0 }
 0x765   :  { %v1760_v17 = vadd.f32 %v2419_v42, %v2381_v55 }
 0x766   :  { %v1669_v21 = vpop.f32.mrf.mxu0 }
 0x767   :  { %v1794_v25 = vsub.f32 %v1790_v53, %v1760_v17  ;;  %v1755_v18 = vadd.f32 %v1754_v51, %v1669_v21 }
 0x768   :  { %v2384_v26 = vpop.f32.mrf.mxu0 }
 0x769   :  { %1798 = vst [vmem:[%s3192_s17 + $0x8] sm:$0xff] %v1794_v25  ;;  %v1793_v56 = vsub.f32 %v1789_v34, %v1755_v18  ;;  %v1770_v46 = vadd.f32 %v2422_v24, %v2384_v26 }
 0x76a   :  { %v1679_v58 = vpop.f32.mrf.mxu0 }
 0x76b   :  { %1797 = vst [vmem:[%s3192_s17] sm:$0xff] %v1793_v56  ;;  %v1796_v59 = vsub.f32 %v1792_v19, %v1770_v46  ;;  %v1765_v61 = vadd.f32 %v1764_v57, %v1679_v58 }
 0x76d   :  { %1800 = vst [vmem:[%s3192_s17 + $0x18] sm:$0xff] %v1796_v59  ;;  %v1795_v62 = vsub.f32 %v1791_v30, %v1765_v61 }
 0x76f   :  { %1799 = vst [vmem:[%s3192_s17 + $0x10] sm:$0xff] %v1795_v62 }

</bundles_post_ra>
